<compile_context>
chip_gen: v7x
topology: tpu7x:2x2x1
jax: 0.10.0
libtpu: 0.0.40
codegen_flags: <defaults>
</compile_context>

<pallas_src>
import random

import jax
import jax.numpy as jnp
from jax.experimental import pallas as pl
from jax.experimental.pallas import tpu as pltpu


NEG_INF = -1e9                      # bias for padded vocab columns
VMEM_LIMIT = 32 * 1024 * 1024       # explicit scoped-VMEM budget


def _encoder_chunk(s, max_chunk=8):
    """Timesteps per encoder grid step (2nd-minor dim of the output block)."""
    if s <= max_chunk:
        return s
    for c in range(max_chunk, 7, -8):       # must be a multiple of 8 sublanes
        if s % c == 0:
            return c
    return s                                # fall back: whole sequence resident


def _decoder_chunk(t, max_chunk=8):
    """Timesteps per decoder grid step (leading dim of the output block)."""
    for c in range(min(t, max_chunk), 0, -1):
        if t % c == 0:
            return c
    return 1


# ----------------------------------------------------------------------------
# Kernel 1: fused encoder — grid=(S//Tc,), Tc timesteps per grid step.
# ----------------------------------------------------------------------------
def encoder_kernel(gi_ref, whh_ref, bhh_ref, waenc_ref, enc_ref, h_scr):
    c = pl.program_id(0)
    tc = gi_ref.shape[0]
    hdim = h_scr.shape[-1]

    @pl.when(c == 0)
    def _():
        h_scr[...] = jnp.zeros_like(h_scr)

    h = h_scr[...]                                  # [B, H] f32
    whh = whh_ref[...]                              # [H, 3H] bf16 (resident)
    bhh = bhh_ref[...]                              # [1, 3H] f32
    waenc = waenc_ref[...]                          # [H, H]  bf16

    for k in range(tc):                             # static unroll over the chunk
        gi = gi_ref[k]                              # [B, 3H] f32 (includes b_ih)
        gh = jnp.dot(h.astype(jnp.bfloat16), whh,
                     preferred_element_type=jnp.float32) + bhh
        # PyTorch GRU gate ordering: (r, z, n)
        r = jax.nn.sigmoid(gi[:, :hdim] + gh[:, :hdim])
        z = jax.nn.sigmoid(gi[:, hdim:2 * hdim] + gh[:, hdim:2 * hdim])
        n = jnp.tanh(gi[:, 2 * hdim:] + r * gh[:, 2 * hdim:])
        h = (1.0 - z) * n + z * h
        encp = jnp.dot(h.astype(jnp.bfloat16), waenc,
                       preferred_element_type=jnp.float32)
        # merged slab: [:H] = GRU output, [H:] = precomputed attention proj
        enc_ref[:, k:k + 1, :] = jnp.concatenate([h, encp], axis=-1)[:, None, :]

    h_scr[...] = h


# ----------------------------------------------------------------------------
# Kernel 2: fused decoder rollout — grid=(T//Tc,), Tc steps per grid step.
# ----------------------------------------------------------------------------
def decoder_kernel(tf_ref,                                      # SMEM prefetch
                   ids_ref, enc_ref, emb_ref, wih_ref, whh_ref,
                   bih_ref, bhh_ref, wah_ref, va_ref, outw_ref, outb_ref,
                   out_ref,                                     # [Tc, B, Vp]
                   h_scr, idx_scr):                             # carries
    c = pl.program_id(0)
    tc = ids_ref.shape[0]
    bsz, s, h2 = enc_ref.shape
    hdim = h2 // 2
    vocab, edim = emb_ref.shape
    vpad = outw_ref.shape[1]

    enc_all = enc_ref[...]                          # [B, S, 2H] f32 (resident)
    enc_vals = enc_all[:, :, :hdim]                 # encoder outputs
    enc_proj = enc_all[:, :, hdim:]                 # enc @ attn W_enc

    @pl.when(c == 0)
    def _():
        h_scr[...] = enc_all[:, s - 1, :hdim]       # encoder final hidden
        idx_scr[...] = jnp.zeros_like(idx_scr)      # unused at i==0 (forced)

    # Hoisted resident loads (kept out of the inner loop).
    emb_tab = emb_ref[...]                          # [V, E]   bf16
    wih_e = wih_ref[:edim, :]                       # [E, 3H]  bf16
    wih_c = wih_ref[edim:, :]                       # [H, 3H]  bf16
    whh = whh_ref[...]                              # [H, 3H]  bf16
    bih = bih_ref[...]                              # [1, 3H]  f32
    bhh = bhh_ref[...]                              # [1, 3H]  f32
    wah = wah_ref[...]                              # [H, H]   bf16
    va = va_ref[...]                                # [1, H]   f32
    outw_h = outw_ref[:hdim, :]                     # [H, Vp]  bf16
    outw_c = outw_ref[hdim:2 * hdim, :]             # [H, Vp]  bf16
    outw_e = outw_ref[2 * hdim:, :]                 # [E, Vp]  bf16
    outb = outb_ref[...]                            # [1, Vp]  f32 (-1e9 on pad)

    vio = jax.lax.broadcasted_iota(jnp.int32, (bsz, vocab), 1)
    vio_p = jax.lax.broadcasted_iota(jnp.int32, (bsz, vpad), 1).astype(jnp.float32)

    h = h_scr[...]                                  # [B, H] f32
    prev_idx = idx_scr[...]                         # [B, 1] int32

    for k in range(tc):                             # static unroll over the chunk
        i = c * tc + k                              # global decode step (0-based)

        # ---- input token: trg[i] if forced (or step 0), else previous argmax
        sel = jnp.logical_or(i == 0, tf_ref[i] != 0)
        tok = jnp.where(sel, ids_ref[k], prev_idx)                     # [B, 1]
        onehot = jnp.where(vio == tok, 1.0, 0.0).astype(jnp.bfloat16)  # [B, V]
        emb = jnp.dot(onehot, emb_tab, preferred_element_type=jnp.float32)

        # ---- additive attention (enc-side projection precomputed by encoder)
        hproj = jnp.dot(h.astype(jnp.bfloat16), wah,
                        preferred_element_type=jnp.float32)            # [B, H]
        energy = jnp.tanh(hproj[:, None, :] + enc_proj)                # [B, S, H]
        scores = jnp.sum(energy * va[None, :, :], axis=-1)             # [B, S]
        m = jnp.max(scores, axis=-1, keepdims=True)
        e = jnp.exp(scores - m)
        attn = e / jnp.sum(e, axis=-1, keepdims=True)                  # [B, S]
        # S-contraction on the MXU (batched einsum, batch-leading layout).
        ctx = jnp.einsum('bqs,bsh->bqh', attn[:, None, :], enc_vals,
                         preferred_element_type=jnp.float32)[:, 0, :]  # [B, H]

        # ---- GRU cell (split-weight form of concat([emb, ctx]) @ W_ih)
        emb16 = emb.astype(jnp.bfloat16)
        ctx16 = ctx.astype(jnp.bfloat16)
        gi = (jnp.dot(emb16, wih_e, preferred_element_type=jnp.float32)
              + jnp.dot(ctx16, wih_c, preferred_element_type=jnp.float32)
              + bih)
        gh = jnp.dot(h.astype(jnp.bfloat16), whh,
                     preferred_element_type=jnp.float32) + bhh
        r = jax.nn.sigmoid(gi[:, :hdim] + gh[:, :hdim])
        z = jax.nn.sigmoid(gi[:, hdim:2 * hdim] + gh[:, hdim:2 * hdim])
        n = jnp.tanh(gi[:, 2 * hdim:] + r * gh[:, 2 * hdim:])
        h = (1.0 - z) * n + z * h

        # ---- output projection (split form of concat([h, ctx, emb]) @ W_out)
        logits = (jnp.dot(h.astype(jnp.bfloat16), outw_h,
                          preferred_element_type=jnp.float32)
                  + jnp.dot(ctx16, outw_c, preferred_element_type=jnp.float32)
                  + jnp.dot(emb16, outw_e, preferred_element_type=jnp.float32)
                  + outb)                                              # [B, Vp]
        out_ref[k] = logits                          # lane-dense (Vp = 128k) store

        # ---- argmax (first index on ties) for the next step's feedback token.
        # Padded columns carry -1e9 bias with zero weights, so they never win.
        mx = jnp.max(logits, axis=-1, keepdims=True)
        cand = jnp.where(logits == mx, vio_p, jnp.float32(vpad))
        prev_idx = jnp.min(cand, axis=-1, keepdims=True).astype(jnp.int32)

    h_scr[...] = h
    idx_scr[...] = prev_idx


# ----------------------------------------------------------------------------
# Parameters (deterministic, synthetic). Kernel-resident weight matrices are
# bf16 (MXU-native on v6e/v7x, halves VMEM/DMA); biases / softmax math stay f32.
# ----------------------------------------------------------------------------
def init_params(key, src_vocab, trg_vocab, emb_dim, hid_dim):
    keys = jax.random.split(key, 16)
    scale = 0.1

    def rnd(k, shape):
        return (scale * jax.random.normal(k, shape)).astype(jnp.float32)

    attn_w = rnd(keys[5], (2 * hid_dim, hid_dim))
    out_dim = hid_dim + hid_dim + emb_dim
    out_w = rnd(keys[12], (out_dim, trg_vocab))
    out_b = rnd(keys[13], (1, trg_vocab))

    # Pad the vocab (lane) axis to a multiple of 128 for lane-dense stores.
    vpad = ((trg_vocab + 127) // 128) * 128
    out_w_pad = jnp.zeros((out_dim, vpad), jnp.float32).at[:, :trg_vocab].set(out_w)
    out_b_pad = jnp.full((1, vpad), NEG_INF, jnp.float32).at[:, :trg_vocab].set(out_b)

    bf16 = jnp.bfloat16
    return {
        # encoder (input projection runs in the wrapper -> keep f32 there)
        "enc_emb": rnd(keys[0], (src_vocab, emb_dim)),
        "enc_wih": rnd(keys[1], (emb_dim, 3 * hid_dim)),
        "enc_whh": rnd(keys[2], (hid_dim, 3 * hid_dim)).astype(bf16),
        "enc_bih": rnd(keys[3], (1, 3 * hid_dim)),
        "enc_bhh": rnd(keys[4], (1, 3 * hid_dim)),
        # attention (single bias-free [2H, H] matrix split into h / enc halves)
        "attn_wh": attn_w[:hid_dim].astype(bf16),
        "attn_wenc": attn_w[hid_dim:].astype(bf16),
        "attn_v": rnd(keys[6], (1, hid_dim)),
        # decoder
        "dec_emb": rnd(keys[7], (trg_vocab, emb_dim)).astype(bf16),
        "dec_wih": rnd(keys[8], (emb_dim + hid_dim, 3 * hid_dim)).astype(bf16),
        "dec_whh": rnd(keys[9], (hid_dim, 3 * hid_dim)).astype(bf16),
        "dec_bih": rnd(keys[10], (1, 3 * hid_dim)),
        "dec_bhh": rnd(keys[11], (1, 3 * hid_dim)),
        "out_w_pad": out_w_pad.astype(bf16),
        "out_b_pad": out_b_pad,
    }


# ----------------------------------------------------------------------------
# Forward pass
# ----------------------------------------------------------------------------
def encoder_forward(params, src):
    """src: [S, B] int32 -> merged encoder slab [B, S, 2H] (outs | attn proj)."""
    s, b = src.shape
    hdim = params["enc_whh"].shape[0]

    # Hoisted: embedding gather + input projection for all timesteps (wrapper
    # XLA ops, per review — keeps the big [S*B, 3H] activation out of VMEM).
    emb_all = jnp.take(params["enc_emb"], src, axis=0)              # [S, B, E]
    gi_all = jnp.dot(emb_all, params["enc_wih"]) + params["enc_bih"]  # [S, B, 3H]

    tc = _encoder_chunk(s)
    assert s % tc == 0

    grid_spec = pltpu.PrefetchScalarGridSpec(
        num_scalar_prefetch=0,
        grid=(s // tc,),
        in_specs=[
            pl.BlockSpec((tc, b, 3 * hdim), lambda c: (c, 0, 0)),   # gi chunk
            pl.BlockSpec((hdim, 3 * hdim), lambda c: (0, 0)),       # W_hh (resident)
            pl.BlockSpec((1, 3 * hdim), lambda c: (0, 0)),          # b_hh
            pl.BlockSpec((hdim, hdim), lambda c: (0, 0)),           # attn W_enc
        ],
        out_specs=pl.BlockSpec((b, tc, 2 * hdim), lambda c: (0, c, 0)),
        scratch_shapes=[pltpu.VMEM((b, hdim), jnp.float32)],        # hidden carry
    )
    return pl.pallas_call(
        encoder_kernel,
        out_shape=jax.ShapeDtypeStruct((b, s, 2 * hdim), jnp.float32),
        grid_spec=grid_spec,
        compiler_params=pltpu.CompilerParams(
            dimension_semantics=("arbitrary",),          # recurrent axis
            vmem_limit_bytes=VMEM_LIMIT),
    )(gi_all, params["enc_whh"], params["enc_bhh"], params["attn_wenc"])


def decoder_rollout(params, tf_mask, trg_ids, enc_slab):
    b, s, h2 = enc_slab.shape
    hdim = h2 // 2
    t = trg_ids.shape[0]
    vocab, edim = params["dec_emb"].shape
    fdim, vpad = params["out_w_pad"].shape

    tc = _decoder_chunk(t)
    assert t % tc == 0

    grid_spec = pltpu.PrefetchScalarGridSpec(
        num_scalar_prefetch=1,                           # teacher-forcing mask
        grid=(t // tc,),
        in_specs=[
            pl.BlockSpec((tc, b, 1), lambda c, tf: (c, 0, 0)),        # trg ids chunk
            pl.BlockSpec((b, s, h2), lambda c, tf: (0, 0, 0)),        # enc slab
            pl.BlockSpec((vocab, edim), lambda c, tf: (0, 0)),        # dec embedding
            pl.BlockSpec((edim + hdim, 3 * hdim), lambda c, tf: (0, 0)),  # dec W_ih
            pl.BlockSpec((hdim, 3 * hdim), lambda c, tf: (0, 0)),     # dec W_hh
            pl.BlockSpec((1, 3 * hdim), lambda c, tf: (0, 0)),        # dec b_ih
            pl.BlockSpec((1, 3 * hdim), lambda c, tf: (0, 0)),        # dec b_hh
            pl.BlockSpec((hdim, hdim), lambda c, tf: (0, 0)),         # attn W_h
            pl.BlockSpec((1, hdim), lambda c, tf: (0, 0)),            # attn v
            pl.BlockSpec((fdim, vpad), lambda c, tf: (0, 0)),         # out W (padded)
            pl.BlockSpec((1, vpad), lambda c, tf: (0, 0)),            # out b (padded)
        ],
        out_specs=pl.BlockSpec((tc, b, vpad), lambda c, tf: (c, 0, 0)),
        scratch_shapes=[
            pltpu.VMEM((b, hdim), jnp.float32),    # hidden carry
            pltpu.VMEM((b, 1), jnp.int32),         # previous-argmax token carry
        ],
    )
    return pl.pallas_call(
        decoder_kernel,
        out_shape=jax.ShapeDtypeStruct((t, b, vpad), jnp.float32),
        grid_spec=grid_spec,
        compiler_params=pltpu.CompilerParams(
            dimension_semantics=("arbitrary",),          # recurrent axis
            vmem_limit_bytes=VMEM_LIMIT),
    )(tf_mask, trg_ids, enc_slab,
      params["dec_emb"], params["dec_wih"], params["dec_whh"],
      params["dec_bih"], params["dec_bhh"],
      params["attn_wh"], params["attn_v"],
      params["out_w_pad"], params["out_b_pad"])


def seq2seq_forward(params, src, trg, teacher_forcing_ratio=0.5):
    """Mirrors Seq2Seq.forward. Returns outputs [max_len, batch, trg_vocab]."""
    max_len, batch = trg.shape
    vocab = params["dec_emb"].shape[0]

    enc_slab = encoder_forward(params, src)

    # Host-side teacher-forcing draws: one random() per reference iteration
    # t = 1..max_len-1, in that order (matching the reference's seeded stream).
    # tf_mask[i] gates kernel step i (reference iteration i+1's input token).
    tf = [0] * max_len
    for t in range(1, max_len):
        tf[t] = 1 if random.random() < teacher_forcing_ratio else 0
    tf_mask = jnp.asarray(tf, dtype=jnp.int32)

    # Forced-path token ids: kernel step i consumes trg[i] when forced.
    # No [T, B, V] one-hot is materialized in HBM.
    trg_ids = trg[:max_len - 1].astype(jnp.int32)[:, :, None]       # [T, B, 1]

    logits = decoder_rollout(params, tf_mask, trg_ids, enc_slab)    # [T, B, Vpad]
    logits = logits[:, :, :vocab]
    # outputs[0] stays zero, as in the reference.
    return jnp.concatenate(
        [jnp.zeros((1, batch, vocab), jnp.float32), logits], axis=0)


# ----------------------------------------------------------------------------
if __name__ == "__main__":
    SRC_LEN, TRG_LEN, BATCH = 8, 8, 8          # batch = one full sublane group
    SRC_VOCAB, TRG_VOCAB = 11, 13
    EMB_DIM, HID_DIM = 16, 32

    random.seed(0)  # deterministic teacher-forcing decisions
    key = jax.random.PRNGKey(0)
    k_par, k_src, k_trg = jax.random.split(key, 3)

    params = init_params(k_par, SRC_VOCAB, TRG_VOCAB, EMB_DIM, HID_DIM)
    src = jax.random.randint(k_src, (SRC_LEN, BATCH), 0, SRC_VOCAB, dtype=jnp.int32)
    trg = jax.random.randint(k_trg, (TRG_LEN, BATCH), 0, TRG_VOCAB, dtype=jnp.int32)

    outputs = seq2seq_forward(params, src, trg, teacher_forcing_ratio=0.5)
    outputs = jax.block_until_ready(outputs)

    assert outputs.shape == (TRG_LEN, BATCH, TRG_VOCAB)
    assert bool(jnp.all(jnp.isfinite(outputs)))
    assert bool(jnp.all(outputs[0] == 0.0))
    print("KERNEL_OK")
</pallas_src>

<mosaic_0001>
module attributes {stable_mosaic.version = 11 : i64} {
  func.func @encoder_kernel(%arg0: i32, %arg1: memref<8x8x96xf32, #tpu.memory_space<vmem>>, %arg2: memref<32x96xbf16, #tpu.memory_space<vmem>>, %arg3: memref<1x96xf32, #tpu.memory_space<vmem>>, %arg4: memref<32x32xbf16, #tpu.memory_space<vmem>>, %arg5: memref<8x8x64xf32, #tpu.memory_space<vmem>>, %arg6: memref<8x32xf32, #tpu.memory_space<vmem>>) attributes {dimension_semantics = [#tpu.dimension_semantics<arbitrary>], iteration_bounds = array<i64: 1>, scalar_prefetch = 0 : i64, scratch_operands = 1 : i64, tpu.core_type = #tpu.core_type<tc>, window_params = [{transform_indices = @transform_0, window_bounds = array<i64: 8, 8, 96>}, {pipeline_mode = #tpu.pipeline_mode<synchronous>, transform_indices = @transform_1, window_bounds = array<i64: 32, 96>}, {pipeline_mode = #tpu.pipeline_mode<synchronous>, transform_indices = @transform_2, window_bounds = array<i64: 1, 96>}, {pipeline_mode = #tpu.pipeline_mode<synchronous>, transform_indices = @transform_3, window_bounds = array<i64: 32, 32>}, {transform_indices = @transform_4, window_bounds = array<i64: 8, 8, 64>}]} {
    %c0_i32 = arith.constant 0 : i32
    %0 = arith.cmpi eq, %arg0, %c0_i32 : i32
    %1 = arith.extui %0 : i1 to i32
    %c0_i32_0 = arith.constant 0 : i32
    %2 = arith.cmpi ne, %1, %c0_i32_0 : i32
    scf.if %2 {
      %cst_90 = arith.constant 0.000000e+00 : f32
      %304 = vector.broadcast %cst_90 : f32 to vector<8x32xf32>
      %c0_91 = arith.constant 0 : index
      %c0_92 = arith.constant 0 : index
      %305 = vector.load %arg6[%c0_91, %c0_92] : memref<8x32xf32, #tpu.memory_space<vmem>>, vector<8x32xf32>
      tpu.vector_store %arg6[%c0_91, %c0_92], %304 {strides = array<i32>} : memref<8x32xf32, #tpu.memory_space<vmem>>, vector<8x32xf32>,
    } else {
    }
    %c0 = arith.constant 0 : index
    %c0_1 = arith.constant 0 : index
    %3 = vector.load %arg6[%c0, %c0_1] : memref<8x32xf32, #tpu.memory_space<vmem>>, vector<8x32xf32>
    %c0_2 = arith.constant 0 : index
    %c0_3 = arith.constant 0 : index
    %4 = vector.load %arg2[%c0_2, %c0_3] : memref<32x96xbf16, #tpu.memory_space<vmem>>, vector<32x96xbf16>
    %c0_4 = arith.constant 0 : index
    %c0_5 = arith.constant 0 : index
    %5 = vector.load %arg3[%c0_4, %c0_5] : memref<1x96xf32, #tpu.memory_space<vmem>>, vector<1x96xf32>
    %c0_6 = arith.constant 0 : index
    %c0_7 = arith.constant 0 : index
    %6 = vector.load %arg4[%c0_6, %c0_7] : memref<32x32xbf16, #tpu.memory_space<vmem>>, vector<32x32xbf16>
    %c0_8 = arith.constant 0 : index
    %c0_9 = arith.constant 0 : index
    %c0_10 = arith.constant 0 : index
    %7 = vector.load %arg1[%c0_8, %c0_9, %c0_10] : memref<8x8x96xf32, #tpu.memory_space<vmem>>, vector<1x8x96xf32>
    %8 = vector.shape_cast %7 : vector<1x8x96xf32> to vector<8x96xf32>
    %9 = arith.truncf %3 : vector<8x32xf32> to vector<8x32xbf16>
    %cst = arith.constant dense<0.000000e+00> : vector<8x96xf32>
    %10 = tpu.matmul %9, %4, %cst {dimension_numbers = #tpu.dot_dimension_numbers<[1], [0], [0], [1], [0, 0, 1, 1], [], []>} : vector<8x32xbf16>, vector<32x96xbf16>, vector<8x96xf32> -> vector<8x96xf32>
    %11 = vector.broadcast %5 : vector<1x96xf32> to vector<8x96xf32>
    %12 = arith.addf %10, %11 : vector<8x96xf32>
    %13 = vector.extract_strided_slice %8 {offsets = [0, 0], sizes = [8, 32], strides = [1, 1]} : vector<8x96xf32> to vector<8x32xf32>
    %14 = vector.extract_strided_slice %12 {offsets = [0, 0], sizes = [8, 32], strides = [1, 1]} : vector<8x96xf32> to vector<8x32xf32>
    %15 = arith.addf %13, %14 : vector<8x32xf32>
    %16 = arith.negf %15 : vector<8x32xf32>
    %17 = math.exp %16 : vector<8x32xf32>
    %cst_11 = arith.constant 1.000000e+00 : f32
    %18 = vector.broadcast %cst_11 : f32 to vector<8x32xf32>
    %19 = arith.addf %18, %17 : vector<8x32xf32>
    %20 = arith.divf %18, %19 : vector<8x32xf32>
    %21 = vector.extract_strided_slice %8 {offsets = [0, 32], sizes = [8, 32], strides = [1, 1]} : vector<8x96xf32> to vector<8x32xf32>
    %22 = vector.extract_strided_slice %12 {offsets = [0, 32], sizes = [8, 32], strides = [1, 1]} : vector<8x96xf32> to vector<8x32xf32>
    %23 = arith.addf %21, %22 : vector<8x32xf32>
    %24 = arith.negf %23 : vector<8x32xf32>
    %25 = math.exp %24 : vector<8x32xf32>
    %cst_12 = arith.constant 1.000000e+00 : f32
    %26 = vector.broadcast %cst_12 : f32 to vector<8x32xf32>
    %27 = arith.addf %26, %25 : vector<8x32xf32>
    %28 = arith.divf %26, %27 : vector<8x32xf32>
    %29 = vector.extract_strided_slice %8 {offsets = [0, 64], sizes = [8, 32], strides = [1, 1]} : vector<8x96xf32> to vector<8x32xf32>
    %30 = vector.extract_strided_slice %12 {offsets = [0, 64], sizes = [8, 32], strides = [1, 1]} : vector<8x96xf32> to vector<8x32xf32>
    %31 = arith.mulf %20, %30 : vector<8x32xf32>
    %32 = arith.addf %29, %31 : vector<8x32xf32>
    %33 = math.tanh %32 : vector<8x32xf32>
    %cst_13 = arith.constant 1.000000e+00 : f32
    %34 = vector.broadcast %cst_13 : f32 to vector<8x32xf32>
    %35 = arith.subf %34, %28 : vector<8x32xf32>
    %36 = arith.mulf %35, %33 : vector<8x32xf32>
    %37 = arith.mulf %28, %3 : vector<8x32xf32>
    %38 = arith.addf %36, %37 : vector<8x32xf32>
    %39 = arith.truncf %38 : vector<8x32xf32> to vector<8x32xbf16>
    %cst_14 = arith.constant dense<0.000000e+00> : vector<8x32xf32>
    %40 = tpu.matmul %39, %6, %cst_14 {dimension_numbers = #tpu.dot_dimension_numbers<[1], [0], [0], [1], [0, 0, 1, 1], [], []>} : vector<8x32xbf16>, vector<32x32xbf16>, vector<8x32xf32> -> vector<8x32xf32>
    %41 = tpu.concatenate %38, %40 in 1 : vector<8x32xf32>, vector<8x32xf32> -> vector<8x64xf32>
    %42 = vector.shape_cast %41 : vector<8x64xf32> to vector<8x1x64xf32>
    %c0_15 = arith.constant 0 : index
    %c0_16 = arith.constant 0 : index
    %c0_17 = arith.constant 0 : index
    %43 = vector.load %arg5[%c0_15, %c0_16, %c0_17] : memref<8x8x64xf32, #tpu.memory_space<vmem>>, vector<8x1x64xf32>
    tpu.vector_store %arg5[%c0_15, %c0_16, %c0_17], %42 {strides = array<i32>} : memref<8x8x64xf32, #tpu.memory_space<vmem>>, vector<8x1x64xf32>,
    %c1 = arith.constant 1 : index
    %c0_18 = arith.constant 0 : index
    %c0_19 = arith.constant 0 : index
    %44 = vector.load %arg1[%c1, %c0_18, %c0_19] : memref<8x8x96xf32, #tpu.memory_space<vmem>>, vector<1x8x96xf32>
    %45 = vector.shape_cast %44 : vector<1x8x96xf32> to vector<8x96xf32>
    %46 = arith.truncf %38 : vector<8x32xf32> to vector<8x32xbf16>
    %cst_20 = arith.constant dense<0.000000e+00> : vector<8x96xf32>
    %47 = tpu.matmul %46, %4, %cst_20 {dimension_numbers = #tpu.dot_dimension_numbers<[1], [0], [0], [1], [0, 0, 1, 1], [], []>} : vector<8x32xbf16>, vector<32x96xbf16>, vector<8x96xf32> -> vector<8x96xf32>
    %48 = vector.broadcast %5 : vector<1x96xf32> to vector<8x96xf32>
    %49 = arith.addf %47, %48 : vector<8x96xf32>
    %50 = vector.extract_strided_slice %45 {offsets = [0, 0], sizes = [8, 32], strides = [1, 1]} : vector<8x96xf32> to vector<8x32xf32>
    %51 = vector.extract_strided_slice %49 {offsets = [0, 0], sizes = [8, 32], strides = [1, 1]} : vector<8x96xf32> to vector<8x32xf32>
    %52 = arith.addf %50, %51 : vector<8x32xf32>
    %53 = arith.negf %52 : vector<8x32xf32>
    %54 = math.exp %53 : vector<8x32xf32>
    %cst_21 = arith.constant 1.000000e+00 : f32
    %55 = vector.broadcast %cst_21 : f32 to vector<8x32xf32>
    %56 = arith.addf %55, %54 : vector<8x32xf32>
    %57 = arith.divf %55, %56 : vector<8x32xf32>
    %58 = vector.extract_strided_slice %45 {offsets = [0, 32], sizes = [8, 32], strides = [1, 1]} : vector<8x96xf32> to vector<8x32xf32>
    %59 = vector.extract_strided_slice %49 {offsets = [0, 32], sizes = [8, 32], strides = [1, 1]} : vector<8x96xf32> to vector<8x32xf32>
    %60 = arith.addf %58, %59 : vector<8x32xf32>
    %61 = arith.negf %60 : vector<8x32xf32>
    %62 = math.exp %61 : vector<8x32xf32>
    %cst_22 = arith.constant 1.000000e+00 : f32
    %63 = vector.broadcast %cst_22 : f32 to vector<8x32xf32>
    %64 = arith.addf %63, %62 : vector<8x32xf32>
    %65 = arith.divf %63, %64 : vector<8x32xf32>
    %66 = vector.extract_strided_slice %45 {offsets = [0, 64], sizes = [8, 32], strides = [1, 1]} : vector<8x96xf32> to vector<8x32xf32>
    %67 = vector.extract_strided_slice %49 {offsets = [0, 64], sizes = [8, 32], strides = [1, 1]} : vector<8x96xf32> to vector<8x32xf32>
    %68 = arith.mulf %57, %67 : vector<8x32xf32>
    %69 = arith.addf %66, %68 : vector<8x32xf32>
    %70 = math.tanh %69 : vector<8x32xf32>
    %cst_23 = arith.constant 1.000000e+00 : f32
    %71 = vector.broadcast %cst_23 : f32 to vector<8x32xf32>
    %72 = arith.subf %71, %65 : vector<8x32xf32>
    %73 = arith.mulf %72, %70 : vector<8x32xf32>
    %74 = arith.mulf %65, %38 : vector<8x32xf32>
    %75 = arith.addf %73, %74 : vector<8x32xf32>
    %76 = arith.truncf %75 : vector<8x32xf32> to vector<8x32xbf16>
    %cst_24 = arith.constant dense<0.000000e+00> : vector<8x32xf32>
    %77 = tpu.matmul %76, %6, %cst_24 {dimension_numbers = #tpu.dot_dimension_numbers<[1], [0], [0], [1], [0, 0, 1, 1], [], []>} : vector<8x32xbf16>, vector<32x32xbf16>, vector<8x32xf32> -> vector<8x32xf32>
    %78 = tpu.concatenate %75, %77 in 1 : vector<8x32xf32>, vector<8x32xf32> -> vector<8x64xf32>
    %79 = vector.shape_cast %78 : vector<8x64xf32> to vector<8x1x64xf32>
    %c0_25 = arith.constant 0 : index
    %c1_26 = arith.constant 1 : index
    %c0_27 = arith.constant 0 : index
    %80 = vector.load %arg5[%c0_25, %c1_26, %c0_27] : memref<8x8x64xf32, #tpu.memory_space<vmem>>, vector<8x1x64xf32>
    tpu.vector_store %arg5[%c0_25, %c1_26, %c0_27], %79 {strides = array<i32>} : memref<8x8x64xf32, #tpu.memory_space<vmem>>, vector<8x1x64xf32>,
    %c2 = arith.constant 2 : index
    %c0_28 = arith.constant 0 : index
    %c0_29 = arith.constant 0 : index
    %81 = vector.load %arg1[%c2, %c0_28, %c0_29] : memref<8x8x96xf32, #tpu.memory_space<vmem>>, vector<1x8x96xf32>
    %82 = vector.shape_cast %81 : vector<1x8x96xf32> to vector<8x96xf32>
    %83 = arith.truncf %75 : vector<8x32xf32> to vector<8x32xbf16>
    %cst_30 = arith.constant dense<0.000000e+00> : vector<8x96xf32>
    %84 = tpu.matmul %83, %4, %cst_30 {dimension_numbers = #tpu.dot_dimension_numbers<[1], [0], [0], [1], [0, 0, 1, 1], [], []>} : vector<8x32xbf16>, vector<32x96xbf16>, vector<8x96xf32> -> vector<8x96xf32>
    %85 = vector.broadcast %5 : vector<1x96xf32> to vector<8x96xf32>
    %86 = arith.addf %84, %85 : vector<8x96xf32>
    %87 = vector.extract_strided_slice %82 {offsets = [0, 0], sizes = [8, 32], strides = [1, 1]} : vector<8x96xf32> to vector<8x32xf32>
    %88 = vector.extract_strided_slice %86 {offsets = [0, 0], sizes = [8, 32], strides = [1, 1]} : vector<8x96xf32> to vector<8x32xf32>
    %89 = arith.addf %87, %88 : vector<8x32xf32>
    %90 = arith.negf %89 : vector<8x32xf32>
    %91 = math.exp %90 : vector<8x32xf32>
    %cst_31 = arith.constant 1.000000e+00 : f32
    %92 = vector.broadcast %cst_31 : f32 to vector<8x32xf32>
    %93 = arith.addf %92, %91 : vector<8x32xf32>
    %94 = arith.divf %92, %93 : vector<8x32xf32>
    %95 = vector.extract_strided_slice %82 {offsets = [0, 32], sizes = [8, 32], strides = [1, 1]} : vector<8x96xf32> to vector<8x32xf32>
    %96 = vector.extract_strided_slice %86 {offsets = [0, 32], sizes = [8, 32], strides = [1, 1]} : vector<8x96xf32> to vector<8x32xf32>
    %97 = arith.addf %95, %96 : vector<8x32xf32>
    %98 = arith.negf %97 : vector<8x32xf32>
    %99 = math.exp %98 : vector<8x32xf32>
    %cst_32 = arith.constant 1.000000e+00 : f32
    %100 = vector.broadcast %cst_32 : f32 to vector<8x32xf32>
    %101 = arith.addf %100, %99 : vector<8x32xf32>
    %102 = arith.divf %100, %101 : vector<8x32xf32>
    %103 = vector.extract_strided_slice %82 {offsets = [0, 64], sizes = [8, 32], strides = [1, 1]} : vector<8x96xf32> to vector<8x32xf32>
    %104 = vector.extract_strided_slice %86 {offsets = [0, 64], sizes = [8, 32], strides = [1, 1]} : vector<8x96xf32> to vector<8x32xf32>
    %105 = arith.mulf %94, %104 : vector<8x32xf32>
    %106 = arith.addf %103, %105 : vector<8x32xf32>
    %107 = math.tanh %106 : vector<8x32xf32>
    %cst_33 = arith.constant 1.000000e+00 : f32
    %108 = vector.broadcast %cst_33 : f32 to vector<8x32xf32>
    %109 = arith.subf %108, %102 : vector<8x32xf32>
    %110 = arith.mulf %109, %107 : vector<8x32xf32>
    %111 = arith.mulf %102, %75 : vector<8x32xf32>
    %112 = arith.addf %110, %111 : vector<8x32xf32>
    %113 = arith.truncf %112 : vector<8x32xf32> to vector<8x32xbf16>
    %cst_34 = arith.constant dense<0.000000e+00> : vector<8x32xf32>
    %114 = tpu.matmul %113, %6, %cst_34 {dimension_numbers = #tpu.dot_dimension_numbers<[1], [0], [0], [1], [0, 0, 1, 1], [], []>} : vector<8x32xbf16>, vector<32x32xbf16>, vector<8x32xf32> -> vector<8x32xf32>
    %115 = tpu.concatenate %112, %114 in 1 : vector<8x32xf32>, vector<8x32xf32> -> vector<8x64xf32>
    %116 = vector.shape_cast %115 : vector<8x64xf32> to vector<8x1x64xf32>
    %c0_35 = arith.constant 0 : index
    %c2_36 = arith.constant 2 : index
    %c0_37 = arith.constant 0 : index
    %117 = vector.load %arg5[%c0_35, %c2_36, %c0_37] : memref<8x8x64xf32, #tpu.memory_space<vmem>>, vector<8x1x64xf32>
    tpu.vector_store %arg5[%c0_35, %c2_36, %c0_37], %116 {strides = array<i32>} : memref<8x8x64xf32, #tpu.memory_space<vmem>>, vector<8x1x64xf32>,
    %c3 = arith.constant 3 : index
    %c0_38 = arith.constant 0 : index
    %c0_39 = arith.constant 0 : index
    %118 = vector.load %arg1[%c3, %c0_38, %c0_39] : memref<8x8x96xf32, #tpu.memory_space<vmem>>, vector<1x8x96xf32>
    %119 = vector.shape_cast %118 : vector<1x8x96xf32> to vector<8x96xf32>
    %120 = arith.truncf %112 : vector<8x32xf32> to vector<8x32xbf16>
    %cst_40 = arith.constant dense<0.000000e+00> : vector<8x96xf32>
    %121 = tpu.matmul %120, %4, %cst_40 {dimension_numbers = #tpu.dot_dimension_numbers<[1], [0], [0], [1], [0, 0, 1, 1], [], []>} : vector<8x32xbf16>, vector<32x96xbf16>, vector<8x96xf32> -> vector<8x96xf32>
    %122 = vector.broadcast %5 : vector<1x96xf32> to vector<8x96xf32>
    %123 = arith.addf %121, %122 : vector<8x96xf32>
    %124 = vector.extract_strided_slice %119 {offsets = [0, 0], sizes = [8, 32], strides = [1, 1]} : vector<8x96xf32> to vector<8x32xf32>
    %125 = vector.extract_strided_slice %123 {offsets = [0, 0], sizes = [8, 32], strides = [1, 1]} : vector<8x96xf32> to vector<8x32xf32>
    %126 = arith.addf %124, %125 : vector<8x32xf32>
    %127 = arith.negf %126 : vector<8x32xf32>
    %128 = math.exp %127 : vector<8x32xf32>
    %cst_41 = arith.constant 1.000000e+00 : f32
    %129 = vector.broadcast %cst_41 : f32 to vector<8x32xf32>
    %130 = arith.addf %129, %128 : vector<8x32xf32>
    %131 = arith.divf %129, %130 : vector<8x32xf32>
    %132 = vector.extract_strided_slice %119 {offsets = [0, 32], sizes = [8, 32], strides = [1, 1]} : vector<8x96xf32> to vector<8x32xf32>
    %133 = vector.extract_strided_slice %123 {offsets = [0, 32], sizes = [8, 32], strides = [1, 1]} : vector<8x96xf32> to vector<8x32xf32>
    %134 = arith.addf %132, %133 : vector<8x32xf32>
    %135 = arith.negf %134 : vector<8x32xf32>
    %136 = math.exp %135 : vector<8x32xf32>
    %cst_42 = arith.constant 1.000000e+00 : f32
    %137 = vector.broadcast %cst_42 : f32 to vector<8x32xf32>
    %138 = arith.addf %137, %136 : vector<8x32xf32>
    %139 = arith.divf %137, %138 : vector<8x32xf32>
    %140 = vector.extract_strided_slice %119 {offsets = [0, 64], sizes = [8, 32], strides = [1, 1]} : vector<8x96xf32> to vector<8x32xf32>
    %141 = vector.extract_strided_slice %123 {offsets = [0, 64], sizes = [8, 32], strides = [1, 1]} : vector<8x96xf32> to vector<8x32xf32>
    %142 = arith.mulf %131, %141 : vector<8x32xf32>
    %143 = arith.addf %140, %142 : vector<8x32xf32>
    %144 = math.tanh %143 : vector<8x32xf32>
    %cst_43 = arith.constant 1.000000e+00 : f32
    %145 = vector.broadcast %cst_43 : f32 to vector<8x32xf32>
    %146 = arith.subf %145, %139 : vector<8x32xf32>
    %147 = arith.mulf %146, %144 : vector<8x32xf32>
    %148 = arith.mulf %139, %112 : vector<8x32xf32>
    %149 = arith.addf %147, %148 : vector<8x32xf32>
    %150 = arith.truncf %149 : vector<8x32xf32> to vector<8x32xbf16>
    %cst_44 = arith.constant dense<0.000000e+00> : vector<8x32xf32>
    %151 = tpu.matmul %150, %6, %cst_44 {dimension_numbers = #tpu.dot_dimension_numbers<[1], [0], [0], [1], [0, 0, 1, 1], [], []>} : vector<8x32xbf16>, vector<32x32xbf16>, vector<8x32xf32> -> vector<8x32xf32>
    %152 = tpu.concatenate %149, %151 in 1 : vector<8x32xf32>, vector<8x32xf32> -> vector<8x64xf32>
    %153 = vector.shape_cast %152 : vector<8x64xf32> to vector<8x1x64xf32>
    %c0_45 = arith.constant 0 : index
    %c3_46 = arith.constant 3 : index
    %c0_47 = arith.constant 0 : index
    %154 = vector.load %arg5[%c0_45, %c3_46, %c0_47] : memref<8x8x64xf32, #tpu.memory_space<vmem>>, vector<8x1x64xf32>
    tpu.vector_store %arg5[%c0_45, %c3_46, %c0_47], %153 {strides = array<i32>} : memref<8x8x64xf32, #tpu.memory_space<vmem>>, vector<8x1x64xf32>,
    %c4 = arith.constant 4 : index
    %c0_48 = arith.constant 0 : index
    %c0_49 = arith.constant 0 : index
    %155 = vector.load %arg1[%c4, %c0_48, %c0_49] : memref<8x8x96xf32, #tpu.memory_space<vmem>>, vector<1x8x96xf32>
    %156 = vector.shape_cast %155 : vector<1x8x96xf32> to vector<8x96xf32>
    %157 = arith.truncf %149 : vector<8x32xf32> to vector<8x32xbf16>
    %cst_50 = arith.constant dense<0.000000e+00> : vector<8x96xf32>
    %158 = tpu.matmul %157, %4, %cst_50 {dimension_numbers = #tpu.dot_dimension_numbers<[1], [0], [0], [1], [0, 0, 1, 1], [], []>} : vector<8x32xbf16>, vector<32x96xbf16>, vector<8x96xf32> -> vector<8x96xf32>
    %159 = vector.broadcast %5 : vector<1x96xf32> to vector<8x96xf32>
    %160 = arith.addf %158, %159 : vector<8x96xf32>
    %161 = vector.extract_strided_slice %156 {offsets = [0, 0], sizes = [8, 32], strides = [1, 1]} : vector<8x96xf32> to vector<8x32xf32>
    %162 = vector.extract_strided_slice %160 {offsets = [0, 0], sizes = [8, 32], strides = [1, 1]} : vector<8x96xf32> to vector<8x32xf32>
    %163 = arith.addf %161, %162 : vector<8x32xf32>
    %164 = arith.negf %163 : vector<8x32xf32>
    %165 = math.exp %164 : vector<8x32xf32>
    %cst_51 = arith.constant 1.000000e+00 : f32
    %166 = vector.broadcast %cst_51 : f32 to vector<8x32xf32>
    %167 = arith.addf %166, %165 : vector<8x32xf32>
    %168 = arith.divf %166, %167 : vector<8x32xf32>
    %169 = vector.extract_strided_slice %156 {offsets = [0, 32], sizes = [8, 32], strides = [1, 1]} : vector<8x96xf32> to vector<8x32xf32>
    %170 = vector.extract_strided_slice %160 {offsets = [0, 32], sizes = [8, 32], strides = [1, 1]} : vector<8x96xf32> to vector<8x32xf32>
    %171 = arith.addf %169, %170 : vector<8x32xf32>
    %172 = arith.negf %171 : vector<8x32xf32>
    %173 = math.exp %172 : vector<8x32xf32>
    %cst_52 = arith.constant 1.000000e+00 : f32
    %174 = vector.broadcast %cst_52 : f32 to vector<8x32xf32>
    %175 = arith.addf %174, %173 : vector<8x32xf32>
    %176 = arith.divf %174, %175 : vector<8x32xf32>
    %177 = vector.extract_strided_slice %156 {offsets = [0, 64], sizes = [8, 32], strides = [1, 1]} : vector<8x96xf32> to vector<8x32xf32>
    %178 = vector.extract_strided_slice %160 {offsets = [0, 64], sizes = [8, 32], strides = [1, 1]} : vector<8x96xf32> to vector<8x32xf32>
    %179 = arith.mulf %168, %178 : vector<8x32xf32>
    %180 = arith.addf %177, %179 : vector<8x32xf32>
    %181 = math.tanh %180 : vector<8x32xf32>
    %cst_53 = arith.constant 1.000000e+00 : f32
    %182 = vector.broadcast %cst_53 : f32 to vector<8x32xf32>
    %183 = arith.subf %182, %176 : vector<8x32xf32>
    %184 = arith.mulf %183, %181 : vector<8x32xf32>
    %185 = arith.mulf %176, %149 : vector<8x32xf32>
    %186 = arith.addf %184, %185 : vector<8x32xf32>
    %187 = arith.truncf %186 : vector<8x32xf32> to vector<8x32xbf16>
    %cst_54 = arith.constant dense<0.000000e+00> : vector<8x32xf32>
    %188 = tpu.matmul %187, %6, %cst_54 {dimension_numbers = #tpu.dot_dimension_numbers<[1], [0], [0], [1], [0, 0, 1, 1], [], []>} : vector<8x32xbf16>, vector<32x32xbf16>, vector<8x32xf32> -> vector<8x32xf32>
    %189 = tpu.concatenate %186, %188 in 1 : vector<8x32xf32>, vector<8x32xf32> -> vector<8x64xf32>
    %190 = vector.shape_cast %189 : vector<8x64xf32> to vector<8x1x64xf32>
    %c0_55 = arith.constant 0 : index
    %c4_56 = arith.constant 4 : index
    %c0_57 = arith.constant 0 : index
    %191 = vector.load %arg5[%c0_55, %c4_56, %c0_57] : memref<8x8x64xf32, #tpu.memory_space<vmem>>, vector<8x1x64xf32>
    tpu.vector_store %arg5[%c0_55, %c4_56, %c0_57], %190 {strides = array<i32>} : memref<8x8x64xf32, #tpu.memory_space<vmem>>, vector<8x1x64xf32>,
    %c5 = arith.constant 5 : index
    %c0_58 = arith.constant 0 : index
    %c0_59 = arith.constant 0 : index
    %192 = vector.load %arg1[%c5, %c0_58, %c0_59] : memref<8x8x96xf32, #tpu.memory_space<vmem>>, vector<1x8x96xf32>
    %193 = vector.shape_cast %192 : vector<1x8x96xf32> to vector<8x96xf32>
    %194 = arith.truncf %186 : vector<8x32xf32> to vector<8x32xbf16>
    %cst_60 = arith.constant dense<0.000000e+00> : vector<8x96xf32>
    %195 = tpu.matmul %194, %4, %cst_60 {dimension_numbers = #tpu.dot_dimension_numbers<[1], [0], [0], [1], [0, 0, 1, 1], [], []>} : vector<8x32xbf16>, vector<32x96xbf16>, vector<8x96xf32> -> vector<8x96xf32>
    %196 = vector.broadcast %5 : vector<1x96xf32> to vector<8x96xf32>
    %197 = arith.addf %195, %196 : vector<8x96xf32>
    %198 = vector.extract_strided_slice %193 {offsets = [0, 0], sizes = [8, 32], strides = [1, 1]} : vector<8x96xf32> to vector<8x32xf32>
    %199 = vector.extract_strided_slice %197 {offsets = [0, 0], sizes = [8, 32], strides = [1, 1]} : vector<8x96xf32> to vector<8x32xf32>
    %200 = arith.addf %198, %199 : vector<8x32xf32>
    %201 = arith.negf %200 : vector<8x32xf32>
    %202 = math.exp %201 : vector<8x32xf32>
    %cst_61 = arith.constant 1.000000e+00 : f32
    %203 = vector.broadcast %cst_61 : f32 to vector<8x32xf32>
    %204 = arith.addf %203, %202 : vector<8x32xf32>
    %205 = arith.divf %203, %204 : vector<8x32xf32>
    %206 = vector.extract_strided_slice %193 {offsets = [0, 32], sizes = [8, 32], strides = [1, 1]} : vector<8x96xf32> to vector<8x32xf32>
    %207 = vector.extract_strided_slice %197 {offsets = [0, 32], sizes = [8, 32], strides = [1, 1]} : vector<8x96xf32> to vector<8x32xf32>
    %208 = arith.addf %206, %207 : vector<8x32xf32>
    %209 = arith.negf %208 : vector<8x32xf32>
    %210 = math.exp %209 : vector<8x32xf32>
    %cst_62 = arith.constant 1.000000e+00 : f32
    %211 = vector.broadcast %cst_62 : f32 to vector<8x32xf32>
    %212 = arith.addf %211, %210 : vector<8x32xf32>
    %213 = arith.divf %211, %212 : vector<8x32xf32>
    %214 = vector.extract_strided_slice %193 {offsets = [0, 64], sizes = [8, 32], strides = [1, 1]} : vector<8x96xf32> to vector<8x32xf32>
    %215 = vector.extract_strided_slice %197 {offsets = [0, 64], sizes = [8, 32], strides = [1, 1]} : vector<8x96xf32> to vector<8x32xf32>
    %216 = arith.mulf %205, %215 : vector<8x32xf32>
    %217 = arith.addf %214, %216 : vector<8x32xf32>
    %218 = math.tanh %217 : vector<8x32xf32>
    %cst_63 = arith.constant 1.000000e+00 : f32
    %219 = vector.broadcast %cst_63 : f32 to vector<8x32xf32>
    %220 = arith.subf %219, %213 : vector<8x32xf32>
    %221 = arith.mulf %220, %218 : vector<8x32xf32>
    %222 = arith.mulf %213, %186 : vector<8x32xf32>
    %223 = arith.addf %221, %222 : vector<8x32xf32>
    %224 = arith.truncf %223 : vector<8x32xf32> to vector<8x32xbf16>
    %cst_64 = arith.constant dense<0.000000e+00> : vector<8x32xf32>
    %225 = tpu.matmul %224, %6, %cst_64 {dimension_numbers = #tpu.dot_dimension_numbers<[1], [0], [0], [1], [0, 0, 1, 1], [], []>} : vector<8x32xbf16>, vector<32x32xbf16>, vector<8x32xf32> -> vector<8x32xf32>
    %226 = tpu.concatenate %223, %225 in 1 : vector<8x32xf32>, vector<8x32xf32> -> vector<8x64xf32>
    %227 = vector.shape_cast %226 : vector<8x64xf32> to vector<8x1x64xf32>
    %c0_65 = arith.constant 0 : index
    %c5_66 = arith.constant 5 : index
    %c0_67 = arith.constant 0 : index
    %228 = vector.load %arg5[%c0_65, %c5_66, %c0_67] : memref<8x8x64xf32, #tpu.memory_space<vmem>>, vector<8x1x64xf32>
    tpu.vector_store %arg5[%c0_65, %c5_66, %c0_67], %227 {strides = array<i32>} : memref<8x8x64xf32, #tpu.memory_space<vmem>>, vector<8x1x64xf32>,
    %c6 = arith.constant 6 : index
    %c0_68 = arith.constant 0 : index
    %c0_69 = arith.constant 0 : index
    %229 = vector.load %arg1[%c6, %c0_68, %c0_69] : memref<8x8x96xf32, #tpu.memory_space<vmem>>, vector<1x8x96xf32>
    %230 = vector.shape_cast %229 : vector<1x8x96xf32> to vector<8x96xf32>
    %231 = arith.truncf %223 : vector<8x32xf32> to vector<8x32xbf16>
    %cst_70 = arith.constant dense<0.000000e+00> : vector<8x96xf32>
    %232 = tpu.matmul %231, %4, %cst_70 {dimension_numbers = #tpu.dot_dimension_numbers<[1], [0], [0], [1], [0, 0, 1, 1], [], []>} : vector<8x32xbf16>, vector<32x96xbf16>, vector<8x96xf32> -> vector<8x96xf32>
    %233 = vector.broadcast %5 : vector<1x96xf32> to vector<8x96xf32>
    %234 = arith.addf %232, %233 : vector<8x96xf32>
    %235 = vector.extract_strided_slice %230 {offsets = [0, 0], sizes = [8, 32], strides = [1, 1]} : vector<8x96xf32> to vector<8x32xf32>
    %236 = vector.extract_strided_slice %234 {offsets = [0, 0], sizes = [8, 32], strides = [1, 1]} : vector<8x96xf32> to vector<8x32xf32>
    %237 = arith.addf %235, %236 : vector<8x32xf32>
    %238 = arith.negf %237 : vector<8x32xf32>
    %239 = math.exp %238 : vector<8x32xf32>
    %cst_71 = arith.constant 1.000000e+00 : f32
    %240 = vector.broadcast %cst_71 : f32 to vector<8x32xf32>
    %241 = arith.addf %240, %239 : vector<8x32xf32>
    %242 = arith.divf %240, %241 : vector<8x32xf32>
    %243 = vector.extract_strided_slice %230 {offsets = [0, 32], sizes = [8, 32], strides = [1, 1]} : vector<8x96xf32> to vector<8x32xf32>
    %244 = vector.extract_strided_slice %234 {offsets = [0, 32], sizes = [8, 32], strides = [1, 1]} : vector<8x96xf32> to vector<8x32xf32>
    %245 = arith.addf %243, %244 : vector<8x32xf32>
    %246 = arith.negf %245 : vector<8x32xf32>
    %247 = math.exp %246 : vector<8x32xf32>
    %cst_72 = arith.constant 1.000000e+00 : f32
    %248 = vector.broadcast %cst_72 : f32 to vector<8x32xf32>
    %249 = arith.addf %248, %247 : vector<8x32xf32>
    %250 = arith.divf %248, %249 : vector<8x32xf32>
    %251 = vector.extract_strided_slice %230 {offsets = [0, 64], sizes = [8, 32], strides = [1, 1]} : vector<8x96xf32> to vector<8x32xf32>
    %252 = vector.extract_strided_slice %234 {offsets = [0, 64], sizes = [8, 32], strides = [1, 1]} : vector<8x96xf32> to vector<8x32xf32>
    %253 = arith.mulf %242, %252 : vector<8x32xf32>
    %254 = arith.addf %251, %253 : vector<8x32xf32>
    %255 = math.tanh %254 : vector<8x32xf32>
    %cst_73 = arith.constant 1.000000e+00 : f32
    %256 = vector.broadcast %cst_73 : f32 to vector<8x32xf32>
    %257 = arith.subf %256, %250 : vector<8x32xf32>
    %258 = arith.mulf %257, %255 : vector<8x32xf32>
    %259 = arith.mulf %250, %223 : vector<8x32xf32>
    %260 = arith.addf %258, %259 : vector<8x32xf32>
    %261 = arith.truncf %260 : vector<8x32xf32> to vector<8x32xbf16>
    %cst_74 = arith.constant dense<0.000000e+00> : vector<8x32xf32>
    %262 = tpu.matmul %261, %6, %cst_74 {dimension_numbers = #tpu.dot_dimension_numbers<[1], [0], [0], [1], [0, 0, 1, 1], [], []>} : vector<8x32xbf16>, vector<32x32xbf16>, vector<8x32xf32> -> vector<8x32xf32>
    %263 = tpu.concatenate %260, %262 in 1 : vector<8x32xf32>, vector<8x32xf32> -> vector<8x64xf32>
    %264 = vector.shape_cast %263 : vector<8x64xf32> to vector<8x1x64xf32>
    %c0_75 = arith.constant 0 : index
    %c6_76 = arith.constant 6 : index
    %c0_77 = arith.constant 0 : index
    %265 = vector.load %arg5[%c0_75, %c6_76, %c0_77] : memref<8x8x64xf32, #tpu.memory_space<vmem>>, vector<8x1x64xf32>
    tpu.vector_store %arg5[%c0_75, %c6_76, %c0_77], %264 {strides = array<i32>} : memref<8x8x64xf32, #tpu.memory_space<vmem>>, vector<8x1x64xf32>,
    %c7 = arith.constant 7 : index
    %c0_78 = arith.constant 0 : index
    %c0_79 = arith.constant 0 : index
    %266 = vector.load %arg1[%c7, %c0_78, %c0_79] : memref<8x8x96xf32, #tpu.memory_space<vmem>>, vector<1x8x96xf32>
    %267 = vector.shape_cast %266 : vector<1x8x96xf32> to vector<8x96xf32>
    %268 = arith.truncf %260 : vector<8x32xf32> to vector<8x32xbf16>
    %cst_80 = arith.constant dense<0.000000e+00> : vector<8x96xf32>
    %269 = tpu.matmul %268, %4, %cst_80 {dimension_numbers = #tpu.dot_dimension_numbers<[1], [0], [0], [1], [0, 0, 1, 1], [], []>} : vector<8x32xbf16>, vector<32x96xbf16>, vector<8x96xf32> -> vector<8x96xf32>
    %270 = vector.broadcast %5 : vector<1x96xf32> to vector<8x96xf32>
    %271 = arith.addf %269, %270 : vector<8x96xf32>
    %272 = vector.extract_strided_slice %267 {offsets = [0, 0], sizes = [8, 32], strides = [1, 1]} : vector<8x96xf32> to vector<8x32xf32>
    %273 = vector.extract_strided_slice %271 {offsets = [0, 0], sizes = [8, 32], strides = [1, 1]} : vector<8x96xf32> to vector<8x32xf32>
    %274 = arith.addf %272, %273 : vector<8x32xf32>
    %275 = arith.negf %274 : vector<8x32xf32>
    %276 = math.exp %275 : vector<8x32xf32>
    %cst_81 = arith.constant 1.000000e+00 : f32
    %277 = vector.broadcast %cst_81 : f32 to vector<8x32xf32>
    %278 = arith.addf %277, %276 : vector<8x32xf32>
    %279 = arith.divf %277, %278 : vector<8x32xf32>
    %280 = vector.extract_strided_slice %267 {offsets = [0, 32], sizes = [8, 32], strides = [1, 1]} : vector<8x96xf32> to vector<8x32xf32>
    %281 = vector.extract_strided_slice %271 {offsets = [0, 32], sizes = [8, 32], strides = [1, 1]} : vector<8x96xf32> to vector<8x32xf32>
    %282 = arith.addf %280, %281 : vector<8x32xf32>
    %283 = arith.negf %282 : vector<8x32xf32>
    %284 = math.exp %283 : vector<8x32xf32>
    %cst_82 = arith.constant 1.000000e+00 : f32
    %285 = vector.broadcast %cst_82 : f32 to vector<8x32xf32>
    %286 = arith.addf %285, %284 : vector<8x32xf32>
    %287 = arith.divf %285, %286 : vector<8x32xf32>
    %288 = vector.extract_strided_slice %267 {offsets = [0, 64], sizes = [8, 32], strides = [1, 1]} : vector<8x96xf32> to vector<8x32xf32>
    %289 = vector.extract_strided_slice %271 {offsets = [0, 64], sizes = [8, 32], strides = [1, 1]} : vector<8x96xf32> to vector<8x32xf32>
    %290 = arith.mulf %279, %289 : vector<8x32xf32>
    %291 = arith.addf %288, %290 : vector<8x32xf32>
    %292 = math.tanh %291 : vector<8x32xf32>
    %cst_83 = arith.constant 1.000000e+00 : f32
    %293 = vector.broadcast %cst_83 : f32 to vector<8x32xf32>
    %294 = arith.subf %293, %287 : vector<8x32xf32>
    %295 = arith.mulf %294, %292 : vector<8x32xf32>
    %296 = arith.mulf %287, %260 : vector<8x32xf32>
    %297 = arith.addf %295, %296 : vector<8x32xf32>
    %298 = arith.truncf %297 : vector<8x32xf32> to vector<8x32xbf16>
    %cst_84 = arith.constant dense<0.000000e+00> : vector<8x32xf32>
    %299 = tpu.matmul %298, %6, %cst_84 {dimension_numbers = #tpu.dot_dimension_numbers<[1], [0], [0], [1], [0, 0, 1, 1], [], []>} : vector<8x32xbf16>, vector<32x32xbf16>, vector<8x32xf32> -> vector<8x32xf32>
    %300 = tpu.concatenate %297, %299 in 1 : vector<8x32xf32>, vector<8x32xf32> -> vector<8x64xf32>
    %301 = vector.shape_cast %300 : vector<8x64xf32> to vector<8x1x64xf32>
    %c0_85 = arith.constant 0 : index
    %c7_86 = arith.constant 7 : index
    %c0_87 = arith.constant 0 : index
    %302 = vector.load %arg5[%c0_85, %c7_86, %c0_87] : memref<8x8x64xf32, #tpu.memory_space<vmem>>, vector<8x1x64xf32>
    tpu.vector_store %arg5[%c0_85, %c7_86, %c0_87], %301 {strides = array<i32>} : memref<8x8x64xf32, #tpu.memory_space<vmem>>, vector<8x1x64xf32>,
    %c0_88 = arith.constant 0 : index
    %c0_89 = arith.constant 0 : index
    %303 = vector.load %arg6[%c0_88, %c0_89] : memref<8x32xf32, #tpu.memory_space<vmem>>, vector<8x32xf32>
    tpu.vector_store %arg6[%c0_88, %c0_89], %297 {strides = array<i32>} : memref<8x32xf32, #tpu.memory_space<vmem>>, vector<8x32xf32>,
    return
  }
  func.func @transform_0(%arg0: i32) -> (i32, i32, i32) {
    %c0_i32 = arith.constant 0 : i32
    %c0_i32_0 = arith.constant 0 : i32
    %c0_i32_1 = arith.constant 0 : i32
    return %arg0, %c0_i32, %c0_i32_0 : i32, i32, i32
  }
  func.func @transform_1(%arg0: i32) -> (i32, i32) {
    %c0_i32 = arith.constant 0 : i32
    %c0_i32_0 = arith.constant 0 : i32
    %c0_i32_1 = arith.constant 0 : i32
    return %c0_i32, %c0_i32_0 : i32, i32
  }
  func.func @transform_2(%arg0: i32) -> (i32, i32) {
    %c0_i32 = arith.constant 0 : i32
    %c0_i32_0 = arith.constant 0 : i32
    %c0_i32_1 = arith.constant 0 : i32
    return %c0_i32, %c0_i32_0 : i32, i32
  }
  func.func @transform_3(%arg0: i32) -> (i32, i32) {
    %c0_i32 = arith.constant 0 : i32
    %c0_i32_0 = arith.constant 0 : i32
    %c0_i32_1 = arith.constant 0 : i32
    return %c0_i32, %c0_i32_0 : i32, i32
  }
  func.func @transform_4(%arg0: i32) -> (i32, i32, i32) {
    %c0_i32 = arith.constant 0 : i32
    %c0_i32_0 = arith.constant 0 : i32
    %c0_i32_1 = arith.constant 0 : i32
    return %c0_i32, %arg0, %c0_i32_0 : i32, i32, i32
  }
}

</mosaic_0001>

<bundles_post_ra>
// kernel: tpu_custom_call.1
= control target key start
LH: loop header
LB: loop body
LE: loop exit
PB: predicated region body
PF: predicated region fallthrough
CT: control target
= control target key end

     0   :  { %9 = vsyncpa [#allocation4], 0  ;;  %s2493_s0 = inlined_call_operand.hbm [shape: f32[8,8,96], index: 0, kind: input, shape index: {}]   ;;  %s2494_s1 = inlined_call_operand.hbm [shape: bf16[32,96], index: 1, kind: input, shape index: {}]   ;;  %s2495_s2 = inlined_call_operand.vmem [shape: f32[1,96], index: 2, kind: input, shape index: {}]   ;;  %s2496_s3 = inlined_call_operand.hbm [shape: bf16[32,32], index: 3, kind: input, shape index: {}]   ;;  %s2497_s4 = inlined_call_operand.hbm [shape: f32[8,8,64], index: 4, kind: output, shape index: {}]  }
   0x1   :  { %10 = vsyncpa [#allocation7], 0 }
   0x2   :  { %11 = vsyncpa [#allocation5], 0  ;;  %s2018_s15 = smov [#allocation6]   ;;  %s1924_s19 = scalar_lea.hbm %s2494_s1, 256 }
   0x3   :  { %s29_s16 = sshll.u32 %s2018_s15, 4  ;;  %p1925_p0 = scmp.ne.s32.totalorder %s2494_s1, %s1924_s19  ;;  %s30_s16 = int_to_ptr.vmem [resolvable:$true] %s29_s16 }
   0x4   :  { %p1928_p1 = scmp.lt.u32.totalorder %s1924_s19, %s2494_s1 }
   0x6   :  { %p1930_p2 = pnand %p1928_p1, %p1925_p0 }
   0x8   :  { %1933 = shalt.err (!%p1930_p2)
}
   0x9   :  { %s1934_s24 = scalar_lea.vmem %s30_s16, 256  ;;  %p1939_p4 = scmp.lt.s32.totalorder %s30_s16, %s30_s16 }
   0xa   :  { %p1935_p3 = scmp.ne.s32.totalorder %s30_s16, %s1934_s24  ;;  %p1940_p5 = scmp.lt.s32.totalorder %s1934_s24, %s1934_s24 }
   0xc   :  { %p1941_p6 = por %p1940_p5, %p1939_p4 }
   0xe   :  { %p1942_p7 = pnand %p1941_p6, %p1935_p3 }
  0x10   :  { %1945 = shalt.err (!%p1942_p7)
}
  0x11   :  { %s2019_s25 = smov 64   ;;  %s2020_s26 = smov 4  }
  0x12   :  { %35 = dma.hbm_to_vmem [thread:$0]  %s2494_s1, 256, %s30_s16, [#allocation7], %s2019_s25, %s2019_s25, %s2020_s26  }
  0x13   :  { %s2021_s29 = smov [#allocation3]   ;;  %s1946_s7 = scalar_lea.hbm %s2493_s0, 1024 }
  0x14   :  { %s17_s30 = sshll.u32 %s2021_s29, 4  ;;  %p1947_p8 = scmp.ne.s32.totalorder %s2493_s0, %s1946_s7  ;;  %s18_s30 = int_to_ptr.vmem [resolvable:$true] %s17_s30 }
  0x15   :  { %p1950_p9 = scmp.lt.u32.totalorder %s1946_s7, %s2493_s0 }
  0x17   :  { %p1952_p10 = pnand %p1950_p9, %p1947_p8 }
  0x19   :  { %1955 = shalt.err (!%p1952_p10)
}
  0x1a   :  { %s1956_s12 = scalar_lea.vmem %s18_s30, 1024  ;;  %p1961_p12 = scmp.lt.s32.totalorder %s18_s30, %s18_s30 }
  0x1b   :  { %p1957_p11 = scmp.ne.s32.totalorder %s18_s30, %s1956_s12  ;;  %p1962_p13 = scmp.lt.s32.totalorder %s1956_s12, %s1956_s12 }
  0x1d   :  { %p1963_p0 = por %p1962_p13, %p1961_p12 }
  0x1f   :  { %p1964_p1 = pnand %p1963_p0, %p1957_p11 }
  0x21   :  { %1967 = shalt.err (!%p1964_p1)
}
  0x22   :  { %s2022_s1 = smov 128   ;;  %s2023_s13 = smov 8  }
  0x23   :  { %23 = dma.hbm_to_vmem [thread:$0]  %s2493_s0, 1024, %s18_s30, [#allocation4], %s2022_s1, %s2022_s1, %s2023_s13  }
  0x24   :  { %s2024_s16 = smov [#allocation8]   ;;  %s1968_s20 = scalar_lea.hbm %s2496_s3, 256 }
  0x25   :  { %s43_s17 = sshll.u32 %s2024_s16, 4  ;;  %p1969_p2 = scmp.ne.s32.totalorder %s2496_s3, %s1968_s20  ;;  %s44_s17 = int_to_ptr.vmem [resolvable:$true] %s43_s17 }
  0x26   :  { %p1972_p3 = scmp.lt.u32.totalorder %s1968_s20, %s2496_s3 }
  0x28   :  { %p1974_p4 = pnand %p1972_p3, %p1969_p2 }
  0x2a   :  { %1977 = shalt.err (!%p1974_p4)
}
  0x2b   :  { %s1978_s27 = scalar_lea.vmem %s44_s17, 256  ;;  %p1983_p6 = scmp.lt.s32.totalorder %s44_s17, %s44_s17 }
  0x2c   :  { %p1979_p5 = scmp.ne.s32.totalorder %s44_s17, %s1978_s27  ;;  %p1984_p7 = scmp.lt.s32.totalorder %s1978_s27, %s1978_s27 }
  0x2e   :  { %p1985_p8 = por %p1984_p7, %p1983_p6 }
  0x30   :  { %p1986_p9 = pnand %p1985_p8, %p1979_p5 }
  0x32   :  { %1989 = shalt.err (!%p1986_p9)
}
  0x33   :  { %49 = dma.hbm_to_vmem [thread:$0]  %s2496_s3, 256, %s44_s17, [#allocation7], %s2019_s25, %s2019_s25, %s2020_s26  }
  0x34   :  { %2012 = dma.done.wait [#allocation4], 1024  }
  0x35   :  { %2013 = vsyncadd [#allocation4], 4294966272 }
  0x36   :  { %2014 = dma.done.wait [#allocation7], 512  }
  0x37   :  { %2015 = vsyncadd [#allocation7], 4294966784  ;;  %vm64_vm0 = vcmask 261120   ;;  %v2025_v0 = vmov 0.0   ;;  %vm2026_vm1 = vmmov 0   ;;  %v2109_v1 = vld [vmem:[#allocation6] sm:$0xff]  }
  0x38   :  { %1731 = vmatprep.subr.bf16.mxu0 %v2025_v0  ;;  %1735 = vmatprep.mubr.msk.bf16.mxu0 %vm2026_vm1, %v2025_v0  ;;  %65 = vst.msk [vmem:[#allocation2] sm:$0xff] %vm64_vm0, %v2025_v0  ;;  %v2112_v2 = vld [vmem:[#allocation6 + $0x8] sm:$0xff]   ;;  %v2127_v5 = vld [vmem:[%s2495_s2] ss:$0 sm:$0xff]  ;;  %v76_v11 = vld [vmem:[#allocation3] sm:$0xff]  ;;  %s2027_s2 = smov 96  }
  0x39   :  { %1739 = vmatprep.subr.bf16.mxu1 %v2025_v0  ;;  %1743 = vmatprep.mubr.msk.bf16.mxu1 %vm2026_vm1, %v2025_v0  ;;  %v2132_v21 = vld [vmem:[#allocation8] sm:$0xff]   ;;  %v2135_v23 = vld [vmem:[#allocation8 + $0x8] sm:$0xff]   ;;  %s2028_s29 = smov 32   ;;  %v306_v41 = vld [vmem:[#allocation3 + $0x8] sm:$0xff]  ;;  %vm296_vm2 = vcmask 516096  }
  0x3a   :  { %1732 = vmatpush3.bf16.msra.mxu0 %v2109_v1  ;;  %1740 = vmatpush3.bf16.msra.mxu1 %v2132_v21 }
  0x3b   :  { %1733 = vmatprep.subr.bf16.mxu0 %v2025_v0  ;;  %1741 = vmatprep.subr.bf16.mxu1 %v2025_v0 }
  0x3e   :  { %1734 = vmatpush3.bf16.msra.mxu0 %v2112_v2  ;;  %1742 = vmatpush3.bf16.msra.mxu1 %v2135_v23 }
  0x3f   :  { %v66_v3 = vld [vmem:[#allocation2] sm:$0xff]  ;;  %1747 = vmatprep.subr.bf16.mxu0 %v2025_v0  ;;  %1755 = vmatprep.subr.bf16.mxu1 %v2025_v0 }
  0x40   :  { %v77_v4 = vpack.c.bf16 %v66_v3, %v66_v3 }
  0x42   :  { %1736 = vmatmul.mubr.msk.bf16.vlgmr.msra.gmra.mrb[0].mxu0 %vm64_vm0, %v77_v4 }
  0x43   :  { %1748 = vmatpush3.bf16.msra.mxu0 %v2109_v1  ;;  %1751 = vmatprep.mubr.msk.bf16.mxu0 %vm2026_vm1, %v2025_v0 }
  0x44   :  { %1749 = vmatprep.subr.bf16.mxu0 %v2025_v0 }
  0x47   :  { %1750 = vmatpush3.bf16.msra.mxu0 %v2112_v2 }
  0x48   :  { %1763 = vmatprep.subr.bf16.mxu0 %v2025_v0 }
 0x115   :  { %v134_v6 = vpop.f32.mrb[0].mxu0 }
 0x116   :  { %v135_v7 = vadd.f32 %v2127_v5, %v134_v6  ;;  %v1737_v8 = vpop.f32.mrb[1].mxu0 }
 0x117   :  { %v137_v9 = vpop.f32.mrb[2].mxu0  ;;  %v496_v8 = vld [vmem:[#allocation3 + $0x10] sm:$0xff] }
 0x118   :  { %148 = vrot.lane.b32.xlu0 %v135_v7, %s2019_s25  ;;  %v1738_v10 = vpop.f32.mrb[3].mxu0  ;;  %v140_v12 = vadd.f32 %v135_v7, %v76_v11 }
 0x11a   :  { %v1658_v13 = vmul.f32 -1.442695, %v140_v12 }
 0x11c   :  { %1876 = vpow2.f32 %v1658_v13 }
 0x126   :  { %v1877_v14 = vpop.eup %1876 }
 0x127   :  { %v144_v15 = vadd.f32 1.0, %v1877_v14 }
 0x129   :  { %1878 = vrcp.f32 %v144_v15 }
 0x133   :  { %v1879_v16 = vpop.eup %1878 }
 0x134   :  { %v158_v25 = vsub.f32 1.0, %v1879_v16 }
 0x18a   :  { %v149_v17 = vpop.permute.xlu0 %148 }
 0x18b   :  { %v151_v18 = vmul.f32 %v1879_v16, %v149_v17 }
 0x18d   :  { %153 = vrot.lane.b32.xlu0 %v151_v18, %s2019_s25 }
 0x1ff   :  { %v154_v19 = vpop.permute.xlu0 %153 }
 0x200   :  { %v156_v20 = vadd.f32 %v154_v19, %v76_v11 }
 0x202   :  { %1880 = vtanh.f32 %v156_v20 }
 0x20c   :  { %v1881_v22 = vpop.eup %1880 }
 0x20d   :  { %160 = vrot.lane.b32.xlu1 %v1881_v22, %s2027_s2 }
 0x211   :  { %165 = vrot.lane.b32.xlu1 %v66_v3, %s2028_s29 }
 0x27f   :  { %v161_v24 = vpop.permute.xlu1 %160 }
 0x280   :  { %v163_v27 = vmul.f32 %v161_v24, %v158_v25 }
 0x283   :  { %v166_v26 = vpop.permute.xlu1 %165 }
 0x284   :  { %v168_v28 = vmul.f32 %v1879_v16, %v166_v26 }
 0x286   :  { %v2142_v29 = vadd.f32 %v168_v28, %v163_v27 }
 0x288   :  { %v170_v30 = vpack.c.bf16 %v2142_v29, %v2142_v29 }
 0x28a   :  { %172 = vrot.lane.b32.xlu0 %v170_v30, %s2027_s2 }
 0x2fc   :  { %v173_v31 = vpop.permute.xlu0 %172 }
 0x2fd   :  { %1744 = vmatmul.mubr.msk.bf16.vlgmr.msra.gmra.mrb[0].mxu1 %vm64_vm0, %v173_v31  ;;  %1752 = vmatmul.mubr.msk.bf16.vlgmr.msra.gmra.mrb[4].mxu0 %vm64_vm0, %v173_v31 }
 0x2fe   :  { %1764 = vmatpush3.bf16.msra.mxu0 %v2109_v1  ;;  %1756 = vmatpush3.bf16.msra.mxu1 %v2132_v21 }
 0x2ff   :  { %1765 = vmatprep.subr.bf16.mxu0 %v2025_v0  ;;  %1757 = vmatprep.subr.bf16.mxu1 %v2025_v0 }
 0x300   :  { %1759 = vmatprep.mubr.msk.bf16.mxu1 %vm2026_vm1, %v2025_v0  ;;  %1767 = vmatprep.mubr.msk.bf16.mxu0 %vm2026_vm1, %v2025_v0 }
 0x302   :  { %1766 = vmatpush3.bf16.msra.mxu0 %v2112_v2  ;;  %1758 = vmatpush3.bf16.msra.mxu1 %v2135_v23 }
 0x303   :  { %1779 = vmatprep.subr.bf16.mxu0 %v2025_v0  ;;  %1771 = vmatprep.subr.bf16.mxu1 %v2025_v0 }
 0x3d0   :  { %v2161_v32 = vpop.f32.mrb[0].mxu1  ;;  %v341_v33 = vpop.f32.mrb[4].mxu0 }
 0x3d1   :  { %v342_v34 = vadd.f32 %v2127_v5, %v341_v33  ;;  %v1745_v35 = vpop.f32.mrb[1].mxu1  ;;  %v1753_v36 = vpop.f32.mrb[5].mxu0 }
 0x3d2   :  { %v226_v37 = vpop.f32.mrb[2].mxu1  ;;  %v344_v38 = vpop.f32.mrb[6].mxu0 }
 0x3d3   :  { %v1746_v39 = vpop.f32.mrb[3].mxu1  ;;  %355 = vrot.lane.b32.xlu1 %v342_v34, %s2019_s25  ;;  %v1754_v40 = vpop.f32.mrb[7].mxu0  ;;  %v347_v42 = vadd.f32 %v342_v34, %v306_v41 }
 0x3d4   :  { %v686_v39 = vld [vmem:[#allocation3 + $0x18] sm:$0xff] }
 0x3d5   :  { %v1663_v43 = vmul.f32 -1.442695, %v347_v42 }
 0x3d7   :  { %1882 = vpow2.f32 %v1663_v43 }
 0x3e1   :  { %v1883_v44 = vpop.eup %1882 }
 0x3e2   :  { %v351_v45 = vadd.f32 1.0, %v1883_v44 }
 0x3e4   :  { %1884 = vrcp.f32 %v351_v45 }
 0x3ee   :  { %v1885_v46 = vpop.eup %1884 }
 0x3ef   :  { %v365_v52 = vsub.f32 1.0, %v1885_v46  ;;  %v371_v54 = vmul.f32 %v1885_v46, %v2142_v29 }
 0x445   :  { %v356_v47 = vpop.permute.xlu1 %355 }
 0x446   :  { %v358_v48 = vmul.f32 %v1885_v46, %v356_v47 }
 0x448   :  { %360 = vrot.lane.b32.xlu0 %v358_v48, %s2019_s25 }
 0x4ba   :  { %v361_v49 = vpop.permute.xlu0 %360 }
 0x4bb   :  { %v363_v50 = vadd.f32 %v361_v49, %v306_v41 }
 0x4bd   :  { %1886 = vtanh.f32 %v363_v50 }
 0x4c7   :  { %v1887_v51 = vpop.eup %1886 }
 0x4c8   :  { %367 = vrot.lane.b32.xlu1 %v1887_v51, %s2027_s2 }
 0x53a   :  { %v368_v53 = vpop.permute.xlu1 %367 }
 0x53b   :  { %v370_v55 = vmul.f32 %v368_v53, %v365_v52 }
 0x53d   :  { %v2168_v56 = vadd.f32 %v371_v54, %v370_v55 }
 0x53f   :  { %v373_v57 = vpack.c.bf16 %v2168_v56, %v2168_v56 }
 0x541   :  { %375 = vrot.lane.b32.xlu0 %v373_v57, %s2027_s2 }
 0x5b3   :  { %v376_v58 = vpop.permute.xlu0 %375 }
 0x5b4   :  { %1760 = vmatmul.mubr.msk.bf16.vlgmr.msra.gmra.mrb[4].mxu1 %vm64_vm0, %v376_v58  ;;  %1768 = vmatmul.mubr.msk.bf16.vlgmr.msra.gmra.mrb[8].mxu0 %vm64_vm0, %v376_v58 }
 0x5b5   :  { %1780 = vmatpush3.bf16.msra.mxu0 %v2109_v1  ;;  %1772 = vmatpush3.bf16.msra.mxu1 %v2132_v21 }
 0x5b6   :  { %1781 = vmatprep.subr.bf16.mxu0 %v2025_v0  ;;  %1773 = vmatprep.subr.bf16.mxu1 %v2025_v0 }
 0x5b7   :  { %1775 = vmatprep.mubr.msk.bf16.mxu1 %vm2026_vm1, %v2025_v0  ;;  %1783 = vmatprep.mubr.msk.bf16.mxu0 %vm2026_vm1, %v2025_v0 }
 0x5b9   :  { %1782 = vmatpush3.bf16.msra.mxu0 %v2112_v2  ;;  %1774 = vmatpush3.bf16.msra.mxu1 %v2135_v23 }
 0x5ba   :  { %1795 = vmatprep.subr.bf16.mxu0 %v2025_v0  ;;  %1787 = vmatprep.subr.bf16.mxu1 %v2025_v0 }
 0x687   :  { %v2187_v59 = vpop.f32.mrb[4].mxu1  ;;  %v531_v60 = vpop.f32.mrb[8].mxu0 }
 0x688   :  { %v532_v61 = vadd.f32 %v2127_v5, %v531_v60  ;;  %v1761_v62 = vpop.f32.mrb[5].mxu1  ;;  %v1769_v63 = vpop.f32.mrb[9].mxu0 }
 0x689   :  { %v417_v3 = vpop.f32.mrb[6].mxu1  ;;  %v534_v4 = vpop.f32.mrb[10].mxu0 }
 0x68a   :  { %v1762_v6 = vpop.f32.mrb[7].mxu1  ;;  %545 = vrot.lane.b32.xlu1 %v532_v61, %s2019_s25  ;;  %v1770_v7 = vpop.f32.mrb[11].mxu0  ;;  %v537_v9 = vadd.f32 %v532_v61, %v496_v8 }
 0x68c   :  { %v1666_v10 = vmul.f32 -1.442695, %v537_v9 }
 0x68e   :  { %1888 = vpow2.f32 %v1666_v10 }
 0x698   :  { %v1889_v11 = vpop.eup %1888 }
 0x699   :  { %v541_v12 = vadd.f32 1.0, %v1889_v11 }
 0x69b   :  { %1890 = vrcp.f32 %v541_v12 }
 0x6a5   :  { %v1891_v13 = vpop.eup %1890 }
 0x6a6   :  { %v555_v19 = vsub.f32 1.0, %v1891_v13  ;;  %v561_v22 = vmul.f32 %v1891_v13, %v2168_v56 }
 0x6fc   :  { %v546_v14 = vpop.permute.xlu1 %545 }
 0x6fd   :  { %v548_v15 = vmul.f32 %v1891_v13, %v546_v14 }
 0x6ff   :  { %550 = vrot.lane.b32.xlu0 %v548_v15, %s2019_s25 }
 0x771   :  { %v551_v16 = vpop.permute.xlu0 %550 }
 0x772   :  { %v553_v17 = vadd.f32 %v551_v16, %v496_v8  ;;  %v876_v8 = vld [vmem:[#allocation3 + $0x20] sm:$0xff] }
 0x774   :  { %1892 = vtanh.f32 %v553_v17 }
 0x77e   :  { %v1893_v18 = vpop.eup %1892 }
 0x77f   :  { %557 = vrot.lane.b32.xlu1 %v1893_v18, %s2027_s2 }
 0x7f1   :  { %v558_v20 = vpop.permute.xlu1 %557 }
 0x7f2   :  { %v560_v24 = vmul.f32 %v558_v20, %v555_v19 }
 0x7f4   :  { %v2194_v25 = vadd.f32 %v561_v22, %v560_v24 }
 0x7f6   :  { %v563_v26 = vpack.c.bf16 %v2194_v25, %v2194_v25 }
 0x7f8   :  { %565 = vrot.lane.b32.xlu0 %v563_v26, %s2027_s2 }
 0x86a   :  { %v566_v27 = vpop.permute.xlu0 %565 }
 0x86b   :  { %1776 = vmatmul.mubr.msk.bf16.vlgmr.msra.gmra.mrb[8].mxu1 %vm64_vm0, %v566_v27  ;;  %1784 = vmatmul.mubr.msk.bf16.vlgmr.msra.gmra.mrb[12].mxu0 %vm64_vm0, %v566_v27 }
 0x86c   :  { %1796 = vmatpush3.bf16.msra.mxu0 %v2109_v1  ;;  %1788 = vmatpush3.bf16.msra.mxu1 %v2132_v21 }
 0x86d   :  { %1797 = vmatprep.subr.bf16.mxu0 %v2025_v0  ;;  %1789 = vmatprep.subr.bf16.mxu1 %v2025_v0 }
 0x86e   :  { %1791 = vmatprep.mubr.msk.bf16.mxu1 %vm2026_vm1, %v2025_v0  ;;  %1799 = vmatprep.mubr.msk.bf16.mxu0 %vm2026_vm1, %v2025_v0 }
 0x870   :  { %1798 = vmatpush3.bf16.msra.mxu0 %v2112_v2  ;;  %1790 = vmatpush3.bf16.msra.mxu1 %v2135_v23 }
 0x871   :  { %1811 = vmatprep.subr.bf16.mxu0 %v2025_v0  ;;  %1803 = vmatprep.subr.bf16.mxu1 %v2025_v0 }
 0x93e   :  { %v2213_v28 = vpop.f32.mrb[8].mxu1  ;;  %v721_v30 = vpop.f32.mrb[12].mxu0 }
 0x93f   :  { %v722_v31 = vadd.f32 %v2127_v5, %v721_v30  ;;  %v1777_v33 = vpop.f32.mrb[9].mxu1  ;;  %v1785_v34 = vpop.f32.mrb[13].mxu0 }
 0x940   :  { %v607_v35 = vpop.f32.mrb[10].mxu1  ;;  %v724_v36 = vpop.f32.mrb[14].mxu0 }
 0x941   :  { %v1778_v37 = vpop.f32.mrb[11].mxu1  ;;  %735 = vrot.lane.b32.xlu1 %v722_v31, %s2019_s25  ;;  %v1786_v38 = vpop.f32.mrb[15].mxu0  ;;  %v727_v40 = vadd.f32 %v722_v31, %v686_v39 }
 0x943   :  { %v1669_v41 = vmul.f32 -1.442695, %v727_v40 }
 0x945   :  { %1894 = vpow2.f32 %v1669_v41  ;;  %v1066_v41 = vld [vmem:[#allocation3 + $0x28] sm:$0xff] }
 0x94f   :  { %v1895_v42 = vpop.eup %1894 }
 0x950   :  { %v731_v43 = vadd.f32 1.0, %v1895_v42 }
 0x952   :  { %1896 = vrcp.f32 %v731_v43 }
 0x95c   :  { %v1897_v44 = vpop.eup %1896 }
 0x95d   :  { %v745_v50 = vsub.f32 1.0, %v1897_v44  ;;  %v751_v52 = vmul.f32 %v1897_v44, %v2194_v25 }
 0x9b3   :  { %v736_v45 = vpop.permute.xlu1 %735 }
 0x9b4   :  { %v738_v46 = vmul.f32 %v1897_v44, %v736_v45 }
 0x9b6   :  { %740 = vrot.lane.b32.xlu0 %v738_v46, %s2019_s25 }
 0xa28   :  { %v741_v47 = vpop.permute.xlu0 %740 }
 0xa29   :  { %v743_v48 = vadd.f32 %v741_v47, %v686_v39 }
 0xa2b   :  { %1898 = vtanh.f32 %v743_v48 }
 0xa35   :  { %v1899_v49 = vpop.eup %1898 }
 0xa36   :  { %747 = vrot.lane.b32.xlu1 %v1899_v49, %s2027_s2 }
 0xaa8   :  { %v748_v51 = vpop.permute.xlu1 %747 }
 0xaa9   :  { %v750_v53 = vmul.f32 %v748_v51, %v745_v50 }
 0xaab   :  { %v2220_v54 = vadd.f32 %v751_v52, %v750_v53 }
 0xaad   :  { %v753_v55 = vpack.c.bf16 %v2220_v54, %v2220_v54 }
 0xaaf   :  { %755 = vrot.lane.b32.xlu0 %v753_v55, %s2027_s2 }
 0xb21   :  { %v756_v57 = vpop.permute.xlu0 %755 }
 0xb22   :  { %1792 = vmatmul.mubr.msk.bf16.vlgmr.msra.gmra.mrb[12].mxu1 %vm64_vm0, %v756_v57  ;;  %1800 = vmatmul.mubr.msk.bf16.vlgmr.msra.gmra.mrb[16].mxu0 %vm64_vm0, %v756_v57 }
 0xb23   :  { %1812 = vmatpush3.bf16.msra.mxu0 %v2109_v1  ;;  %1804 = vmatpush3.bf16.msra.mxu1 %v2132_v21 }
 0xb24   :  { %1813 = vmatprep.subr.bf16.mxu0 %v2025_v0  ;;  %1805 = vmatprep.subr.bf16.mxu1 %v2025_v0 }
 0xb25   :  { %1807 = vmatprep.mubr.msk.bf16.mxu1 %vm2026_vm1, %v2025_v0  ;;  %1815 = vmatprep.mubr.msk.bf16.mxu0 %vm2026_vm1, %v2025_v0 }
 0xb27   :  { %1814 = vmatpush3.bf16.msra.mxu0 %v2112_v2  ;;  %1806 = vmatpush3.bf16.msra.mxu1 %v2135_v23 }
 0xb28   :  { %1827 = vmatprep.subr.bf16.mxu0 %v2025_v0  ;;  %1819 = vmatprep.subr.bf16.mxu1 %v2025_v0 }
 0xbf5   :  { %v2239_v58 = vpop.f32.mrb[12].mxu1  ;;  %v911_v60 = vpop.f32.mrb[16].mxu0 }
 0xbf6   :  { %v912_v61 = vadd.f32 %v2127_v5, %v911_v60  ;;  %v1793_v62 = vpop.f32.mrb[13].mxu1  ;;  %v1801_v63 = vpop.f32.mrb[17].mxu0 }
 0xbf7   :  { %v797_v3 = vpop.f32.mrb[14].mxu1  ;;  %v914_v4 = vpop.f32.mrb[18].mxu0 }
 0xbf8   :  { %v1794_v6 = vpop.f32.mrb[15].mxu1  ;;  %925 = vrot.lane.b32.xlu1 %v912_v61, %s2019_s25  ;;  %v1802_v7 = vpop.f32.mrb[19].mxu0  ;;  %v917_v9 = vadd.f32 %v912_v61, %v876_v8 }
 0xbfa   :  { %v1672_v10 = vmul.f32 -1.442695, %v917_v9 }
 0xbfc   :  { %1900 = vpow2.f32 %v1672_v10 }
 0xc06   :  { %v1901_v11 = vpop.eup %1900 }
 0xc07   :  { %v921_v12 = vadd.f32 1.0, %v1901_v11  ;;  %v1256_v11 = vld [vmem:[#allocation3 + $0x30] sm:$0xff] }
 0xc09   :  { %1902 = vrcp.f32 %v921_v12 }
 0xc13   :  { %v1903_v13 = vpop.eup %1902 }
 0xc14   :  { %v935_v19 = vsub.f32 1.0, %v1903_v13  ;;  %v941_v22 = vmul.f32 %v1903_v13, %v2220_v54 }
 0xc6a   :  { %v926_v14 = vpop.permute.xlu1 %925 }
 0xc6b   :  { %v928_v15 = vmul.f32 %v1903_v13, %v926_v14 }
 0xc6d   :  { %930 = vrot.lane.b32.xlu0 %v928_v15, %s2019_s25 }
 0xcdf   :  { %v931_v16 = vpop.permute.xlu0 %930 }
 0xce0   :  { %v933_v17 = vadd.f32 %v931_v16, %v876_v8 }
 0xce2   :  { %1904 = vtanh.f32 %v933_v17 }
 0xcec   :  { %v1905_v18 = vpop.eup %1904 }
 0xced   :  { %937 = vrot.lane.b32.xlu1 %v1905_v18, %s2027_s2 }
 0xd5f   :  { %v938_v20 = vpop.permute.xlu1 %937 }
 0xd60   :  { %v940_v24 = vmul.f32 %v938_v20, %v935_v19 }
 0xd62   :  { %v2246_v26 = vadd.f32 %v941_v22, %v940_v24 }
 0xd64   :  { %v943_v27 = vpack.c.bf16 %v2246_v26, %v2246_v26 }
 0xd66   :  { %945 = vrot.lane.b32.xlu0 %v943_v27, %s2027_s2 }
 0xdd8   :  { %v946_v30 = vpop.permute.xlu0 %945 }
 0xdd9   :  { %1808 = vmatmul.mubr.msk.bf16.vlgmr.msra.gmra.mrb[16].mxu1 %vm64_vm0, %v946_v30  ;;  %1816 = vmatmul.mubr.msk.bf16.vlgmr.msra.gmra.mrb[20].mxu0 %vm64_vm0, %v946_v30 }
 0xdda   :  { %1828 = vmatpush3.bf16.msra.mxu0 %v2109_v1  ;;  %1820 = vmatpush3.bf16.msra.mxu1 %v2132_v21 }
 0xddb   :  { %1829 = vmatprep.subr.bf16.mxu0 %v2025_v0  ;;  %1821 = vmatprep.subr.bf16.mxu1 %v2025_v0 }
 0xddc   :  { %1823 = vmatprep.mubr.msk.bf16.mxu1 %vm2026_vm1, %v2025_v0  ;;  %1831 = vmatprep.mubr.msk.bf16.mxu0 %vm2026_vm1, %v2025_v0 }
 0xdde   :  { %1830 = vmatpush3.bf16.msra.mxu0 %v2112_v2  ;;  %1822 = vmatpush3.bf16.msra.mxu1 %v2135_v23 }
 0xddf   :  { %1843 = vmatprep.subr.bf16.mxu0 %v2025_v0  ;;  %1835 = vmatprep.subr.bf16.mxu1 %v2025_v0 }
 0xeac   :  { %v2265_v31 = vpop.f32.mrb[16].mxu1  ;;  %v1101_v33 = vpop.f32.mrb[20].mxu0 }
 0xead   :  { %v1102_v34 = vadd.f32 %v2127_v5, %v1101_v33  ;;  %v1809_v35 = vpop.f32.mrb[17].mxu1  ;;  %v1817_v36 = vpop.f32.mrb[21].mxu0 }
 0xeae   :  { %v987_v37 = vpop.f32.mrb[18].mxu1  ;;  %v1104_v38 = vpop.f32.mrb[22].mxu0 }
 0xeaf   :  { %v1810_v39 = vpop.f32.mrb[19].mxu1  ;;  %1115 = vrot.lane.b32.xlu1 %v1102_v34, %s2019_s25  ;;  %v1818_v40 = vpop.f32.mrb[23].mxu0  ;;  %v1107_v42 = vadd.f32 %v1102_v34, %v1066_v41 }
 0xeb1   :  { %v1675_v43 = vmul.f32 -1.442695, %v1107_v42 }
 0xeb3   :  { %1906 = vpow2.f32 %v1675_v43 }
 0xebd   :  { %v1907_v44 = vpop.eup %1906 }
 0xebe   :  { %v1111_v45 = vadd.f32 1.0, %v1907_v44 }
 0xec0   :  { %1908 = vrcp.f32 %v1111_v45 }
 0xeca   :  { %v1909_v46 = vpop.eup %1908 }
 0xecb   :  { %v1125_v52 = vsub.f32 1.0, %v1909_v46  ;;  %v1131_v55 = vmul.f32 %v1909_v46, %v2246_v26 }
 0xf21   :  { %v1116_v47 = vpop.permute.xlu1 %1115 }
 0xf22   :  { %v1118_v48 = vmul.f32 %v1909_v46, %v1116_v47 }
 0xf24   :  { %1120 = vrot.lane.b32.xlu0 %v1118_v48, %s2019_s25 }
 0xf96   :  { %v1121_v49 = vpop.permute.xlu0 %1120 }
 0xf97   :  { %v1123_v50 = vadd.f32 %v1121_v49, %v1066_v41 }
 0xf99   :  { %1910 = vtanh.f32 %v1123_v50 }
 0xfa3   :  { %v1911_v51 = vpop.eup %1910 }
 0xfa4   :  { %1127 = vrot.lane.b32.xlu1 %v1911_v51, %s2027_s2 }
0x1016   :  { %v1128_v53 = vpop.permute.xlu1 %1127 }
0x1017   :  { %v1130_v57 = vmul.f32 %v1128_v53, %v1125_v52 }
0x1019   :  { %v2272_v60 = vadd.f32 %v1131_v55, %v1130_v57 }
0x101b   :  { %v1133_v61 = vpack.c.bf16 %v2272_v60, %v2272_v60 }
0x101d   :  { %1135 = vrot.lane.b32.xlu0 %v1133_v61, %s2027_s2 }
0x108f   :  { %v1136_v62 = vpop.permute.xlu0 %1135 }
0x1090   :  { %1824 = vmatmul.mubr.msk.bf16.vlgmr.msra.gmra.mrb[20].mxu1 %vm64_vm0, %v1136_v62  ;;  %1832 = vmatmul.mubr.msk.bf16.vlgmr.msra.gmra.mrb[24].mxu0 %vm64_vm0, %v1136_v62  ;;  %v243_v62 = vlaneseq }
0x1091   :  { %1844 = vmatpush3.bf16.msra.mxu0 %v2109_v1  ;;  %1836 = vmatpush3.bf16.msra.mxu1 %v2132_v21 }
0x1092   :  { %1845 = vmatprep.subr.bf16.mxu0 %v2025_v0  ;;  %1837 = vmatprep.subr.bf16.mxu1 %v2025_v0 }
0x1093   :  { %1839 = vmatprep.mubr.msk.bf16.mxu1 %vm2026_vm1, %v2025_v0  ;;  %1847 = vmatprep.mubr.msk.bf16.mxu0 %vm2026_vm1, %v2025_v0 }
0x1095   :  { %1846 = vmatpush3.bf16.msra.mxu0 %v2112_v2  ;;  %1838 = vmatpush3.bf16.msra.mxu1 %v2135_v23 }
0x1096   :  { %1851 = vmatprep.subr.bf16.mxu1 %v2025_v0 }
0x1163   :  { %v2290_v63 = vpop.f32.mrb[20].mxu1  ;;  %v1291_v1 = vpop.f32.mrb[24].mxu0 }
0x1164   :  { %v1292_v3 = vadd.f32 %v2127_v5, %v1291_v1  ;;  %v1825_v4 = vpop.f32.mrb[21].mxu1  ;;  %v1833_v6 = vpop.f32.mrb[25].mxu0 }
0x1165   :  { %v1177_v7 = vpop.f32.mrb[22].mxu1  ;;  %v1294_v8 = vpop.f32.mrb[26].mxu0 }
0x1166   :  { %v1826_v9 = vpop.f32.mrb[23].mxu1  ;;  %1305 = vrot.lane.b32.xlu1 %v1292_v3, %s2019_s25  ;;  %v1834_v10 = vpop.f32.mrb[27].mxu0  ;;  %v1297_v12 = vadd.f32 %v1292_v3, %v1256_v11 }
0x1168   :  { %v1678_v2 = vmul.f32 -1.442695, %v1297_v12 }
0x116a   :  { %1912 = vpow2.f32 %v1678_v2 }
0x1174   :  { %v1913_v13 = vpop.eup %1912 }
0x1175   :  { %v1301_v14 = vadd.f32 1.0, %v1913_v13 }
0x1177   :  { %1914 = vrcp.f32 %v1301_v14 }
0x1181   :  { %v1915_v15 = vpop.eup %1914 }
0x1182   :  { %v1315_v22 = vsub.f32 1.0, %v1915_v15  ;;  %v1321_v27 = vmul.f32 %v1915_v15, %v2272_v60 }
0x11d8   :  { %v1306_v16 = vpop.permute.xlu1 %1305 }
0x11d9   :  { %v1308_v17 = vmul.f32 %v1915_v15, %v1306_v16 }
0x11db   :  { %1310 = vrot.lane.b32.xlu0 %v1308_v17, %s2019_s25 }
0x124d   :  { %v1311_v18 = vpop.permute.xlu0 %1310 }
0x124e   :  { %v1313_v19 = vadd.f32 %v1311_v18, %v1256_v11 }
0x1250   :  { %1916 = vtanh.f32 %v1313_v19 }
0x125a   :  { %v1917_v20 = vpop.eup %1916 }
0x125b   :  { %1317 = vrot.lane.b32.xlu1 %v1917_v20, %s2027_s2 }
0x12cd   :  { %v1318_v24 = vpop.permute.xlu1 %1317 }
0x12ce   :  { %v1320_v30 = vmul.f32 %v1318_v24, %v1315_v22 }
0x12d0   :  { %v1322_v33 = vadd.f32 %v1321_v27, %v1320_v30 }
0x12d2   :  { %v1323_v34 = vpack.c.bf16 %v1322_v33, %v1322_v33 }
0x12d4   :  { %1325 = vrot.lane.b32.xlu0 %v1323_v34, %s2027_s2 }
0x1346   :  { %v1326_v35 = vpop.permute.xlu0 %1325 }
0x1347   :  { %1840 = vmatmul.mubr.msk.bf16.vlgmr.msra.gmra.mrb[24].mxu1 %vm64_vm0, %v1326_v35  ;;  %1848 = vmatmul.mubr.msk.bf16.vlgmr.msra.gmra.mrb[28].mxu0 %vm64_vm0, %v1326_v35 }
0x1348   :  { %1852 = vmatpush3.bf16.msra.mxu1 %v2132_v21  ;;  %1855 = vmatprep.mubr.msk.bf16.mxu1 %vm2026_vm1, %v2025_v0  ;;  %v1446_v21 = vld [vmem:[#allocation3 + $0x38] sm:$0xff] }
0x1349   :  { %1853 = vmatprep.subr.bf16.mxu1 %v2025_v0 }
0x134c   :  { %1854 = vmatpush3.bf16.msra.mxu1 %v2135_v23 }
0x141a   :  { %v1364_v36 = vpop.f32.mrb[24].mxu1  ;;  %v1481_v37 = vpop.f32.mrb[28].mxu0 }
0x141b   :  { %v1482_v38 = vadd.f32 %v2127_v5, %v1481_v37  ;;  %v1841_v39 = vpop.f32.mrb[25].mxu1  ;;  %v1849_v40 = vpop.f32.mrb[29].mxu0 }
0x141c   :  { %v1367_v41 = vpop.f32.mrb[26].mxu1  ;;  %v1484_v42 = vpop.f32.mrb[30].mxu0 }
0x141d   :  { %v1842_v43 = vpop.f32.mrb[27].mxu1  ;;  %1495 = vrot.lane.b32.xlu1 %v1482_v38, %s2019_s25  ;;  %v1850_v44 = vpop.f32.mrb[31].mxu0  ;;  %v1487_v45 = vadd.f32 %v1482_v38, %v1446_v21 }
0x141f   :  { %v1681_v46 = vmul.f32 -1.442695, %v1487_v45 }
0x1421   :  { %1918 = vpow2.f32 %v1681_v46 }
0x142b   :  { %v1919_v47 = vpop.eup %1918 }
0x142c   :  { %v1491_v0 = vadd.f32 1.0, %v1919_v47 }
0x142e   :  { %1920 = vrcp.f32 %v1491_v0 }
0x1438   :  { %v1921_v23 = vpop.eup %1920 }
0x1439   :  { %v1505_v52 = vsub.f32 1.0, %v1921_v23 }
0x148f   :  { %v1496_v48 = vpop.permute.xlu1 %1495 }
0x1490   :  { %v1498_v49 = vmul.f32 %v1921_v23, %v1496_v48 }
0x1492   :  { %1500 = vrot.lane.b32.xlu0 %v1498_v49, %s2019_s25  ;;  %s2030_s25 = smov [#allocation9]  }
0x1493   :  { %s1641_s30 = sshll.u32 %s2030_s25, 4  ;;  %s1642_s30 = int_to_ptr.vmem [resolvable:$true] %s1641_s30 }
0x1494   :  { %s1990_s5 = scalar_lea.vmem %s1642_s30, 1024  ;;  %p1995_p11 = scmp.lt.s32.totalorder %s1642_s30, %s1642_s30 }
0x1495   :  { %p1991_p10 = scmp.ne.s32.totalorder %s1642_s30, %s1990_s5  ;;  %p1996_p12 = scmp.lt.s32.totalorder %s1990_s5, %s1990_s5 }
0x1497   :  { %p1997_p13 = por %p1996_p12, %p1995_p11 }
0x1499   :  { %p1998_p0 = pnand %p1997_p13, %p1991_p10 }
0x1504   :  { %v1501_v5 = vpop.permute.xlu0 %1500 }
0x1505   :  { %v1503_v50 = vadd.f32 %v1501_v5, %v1446_v21 }
0x1507   :  { %1922 = vtanh.f32 %v1503_v50 }
0x1511   :  { %v1923_v51 = vpop.eup %1922 }
0x1512   :  { %1507 = vrot.lane.b32.xlu1 %v1923_v51, %s2027_s2 }
0x1516   :  { %230 = vrot.lane.b32.xlu1 %v2142_v29, %s2027_s2  ;;  %v1511_v29 = vmul.f32 %v1921_v23, %v1322_v33 }
0x151a   :  { %421 = vrot.lane.b32.xlu1 %v2168_v56, %s2027_s2 }
0x151e   :  { %611 = vrot.lane.b32.xlu1 %v2194_v25, %s2027_s2 }
0x1522   :  { %801 = vrot.lane.b32.xlu1 %v2220_v54, %s2027_s2 }
0x1526   :  { %991 = vrot.lane.b32.xlu1 %v2246_v26, %s2027_s2 }
0x152a   :  { %1181 = vrot.lane.b32.xlu1 %v2272_v60, %s2027_s2 }
0x152e   :  { %1371 = vrot.lane.b32.xlu1 %v1322_v33, %s2027_s2 }
0x1584   :  { %v1508_v53 = vpop.permute.xlu1 %1507 }
0x1585   :  { %v1510_v55 = vmul.f32 %v1508_v53, %v1505_v52 }
0x1587   :  { %v1512_v57 = vadd.f32 %v1511_v29, %v1510_v55 }
0x1588   :  { %v231_v25 = vpop.permute.xlu1 %230 }
0x1589   :  { %1561 = vrot.lane.b32.xlu1 %v1512_v57, %s2027_s2  ;;  %v1513_v56 = vpack.c.bf16 %v1512_v57, %v1512_v57 }
0x158b   :  { %1515 = vrot.lane.b32.xlu0 %v1513_v56, %s2027_s2 }
0x158c   :  { %v422_v54 = vpop.permute.xlu1 %421 }
0x158f   :  { %234 = vrot.lane.b32.xlu0 %v2161_v32, %s2028_s29 }
0x1590   :  { %v612_v32 = vpop.permute.xlu1 %611 }
0x1593   :  { %425 = vrot.lane.b32.xlu0 %v2187_v59, %s2028_s29 }
0x1594   :  { %v2337_v26 = vpop.permute.xlu1 %801 }
0x1597   :  { %615 = vrot.lane.b32.xlu0 %v2213_v28, %s2028_s29 }
0x1598   :  { %v2339_v59 = vpop.permute.xlu1 %991 }
0x159b   :  { %805 = vrot.lane.b32.xlu0 %v2239_v58, %s2028_s29  ;;  %v2029_v58 = vmov 1966171168  }
0x159c   :  { %v2341_v60 = vpop.permute.xlu1 %1181  ;;  %v241_v61 = vunpack.c.l.s4 %v2029_v58 }
0x159e   :  { %v242_v1 = vunpack.c.0.s8 %v241_v61 }
0x159f   :  { %995 = vrot.lane.b32.xlu0 %v2265_v31, %s2028_s29 }
0x15a0   :  { %v2343_v28 = vpop.permute.xlu1 %1371 }
0x15a3   :  { %1185 = vrot.lane.b32.xlu0 %v2290_v63, %s2028_s29  ;;  %v244_v63 = vshrl.u32 %v243_v62, 7 }
0x15a5   :  { %v2350_v4 = vsub.s32 %v242_v1, %v244_v63 }
0x15a7   :  { %1375 = vrot.lane.b32.xlu0 %v1364_v36, %s2028_s29 }
0x15fb   :  { %v2345_v31 = vpop.permute.xlu1 %1561 }
0x15fc   :  { %1635 = vst.msk [vmem:[#allocation2] sm:$0xff] %vm64_vm0, %v2345_v31 }
0x15fd   :  { %v1516_v3 = vpop.permute.xlu0 %1515 }
0x15fe   :  { %1856 = vmatmul.mubr.msk.bf16.vlgmr.msra.gmra.mrb[28].mxu1 %vm64_vm0, %v1516_v3 }
0x1601   :  { %v235_v6 = vpop.permute.xlu0 %234 }
0x1602   :  { %v237_v7 = vsel %vm64_vm0, %v231_v25, %v235_v6 }
0x1603   :  { %v239_v8 = vcombine.high %v237_v7, %v237_v7  ;;  %v246_v9 = vrot.slane %v237_v7, %v2350_v4 }
0x1605   :  { %v253_v10 = vrot.slane %v239_v8, %v2350_v4  ;;  %v254_v11 = vcombine.high %v246_v9, %v246_v9  ;;  %v262_v12 = vrot.slane %v246_v9, %v2350_v4  ;;  %v426_v2 = vpop.permute.xlu0 %425 }
0x1606   :  { %v428_v13 = vsel %vm64_vm0, %v422_v54, %v426_v2 }
0x1607   :  { %v255_v14 = vcombine.high %v253_v10, %v253_v10  ;;  %v269_v15 = vrot.slane %v253_v10, %v2350_v4  ;;  %v276_v16 = vrot.slane %v254_v11, %v2350_v4  ;;  %v284_v17 = vcombine.high %v262_v12, %v262_v12  ;;  %297 = vst.msk [vmem:[#allocation9] sm:$0x1] %vm296_vm2, %v262_v12 }
0x1608   :  { %v430_v18 = vcombine.high %v428_v13, %v428_v13  ;;  %v437_v19 = vrot.slane %v428_v13, %v2350_v4 }
0x1609   :  { %v283_v20 = vrot.slane %v255_v14, %v2350_v4  ;;  %v285_v22 = vcombine.high %v269_v15, %v269_v15  ;;  %v286_v24 = vcombine.high %v276_v16, %v276_v16  ;;  %298 = vst.msk [vmem:[#allocation9 + $0x8] sm:$0x1] %vm296_vm2, %v276_v16  ;;  %299 = vst.msk [vmem:[#allocation9 + $0x10] sm:$0x1] %vm296_vm2, %v284_v17  ;;  %v616_v27 = vpop.permute.xlu0 %615 }
0x160a   :  { %301 = vst.msk [vmem:[#allocation9 + $0x20] sm:$0x1] %vm296_vm2, %v269_v15  ;;  %v444_v30 = vrot.slane %v430_v18, %v2350_v4  ;;  %v445_v33 = vcombine.high %v437_v19, %v437_v19  ;;  %v453_v34 = vrot.slane %v437_v19, %v2350_v4  ;;  %v618_v35 = vsel %vm64_vm0, %v612_v32, %v616_v27 }
0x160b   :  { %v287_v36 = vcombine.high %v283_v20, %v283_v20  ;;  %300 = vst.msk [vmem:[#allocation9 + $0x18] sm:$0x1] %vm296_vm2, %v286_v24  ;;  %302 = vst.msk [vmem:[#allocation9 + $0x28] sm:$0x1] %vm296_vm2, %v283_v20  ;;  %v620_v37 = vcombine.high %v618_v35, %v618_v35  ;;  %v627_v38 = vrot.slane %v618_v35, %v2350_v4 }
0x160c   :  { %303 = vst.msk [vmem:[#allocation9 + $0x30] sm:$0x1] %vm296_vm2, %v285_v22  ;;  %v446_v39 = vcombine.high %v444_v30, %v444_v30  ;;  %v460_v40 = vrot.slane %v444_v30, %v2350_v4  ;;  %v467_v41 = vrot.slane %v445_v33, %v2350_v4  ;;  %v475_v42 = vcombine.high %v453_v34, %v453_v34 }
0x160d   :  { %487 = vst.msk [vmem:[#allocation9 + $0x1] sm:$0x1] %vm296_vm2, %v453_v34  ;;  %304 = vst.msk [vmem:[#allocation9 + $0x38] sm:$0x1] %vm296_vm2, %v287_v36  ;;  %v634_v43 = vrot.slane %v620_v37, %v2350_v4  ;;  %v635_v44 = vcombine.high %v627_v38, %v627_v38  ;;  %v643_v21 = vrot.slane %v627_v38, %v2350_v4  ;;  %v806_v45 = vpop.permute.xlu0 %805 }
0x160e   :  { %v474_v46 = vrot.slane %v446_v39, %v2350_v4  ;;  %v476_v47 = vcombine.high %v460_v40, %v460_v40  ;;  %v477_v0 = vcombine.high %v467_v41, %v467_v41  ;;  %488 = vst.msk [vmem:[#allocation9 + $0x9] sm:$0x1] %vm296_vm2, %v467_v41  ;;  %489 = vst.msk [vmem:[#allocation9 + $0x11] sm:$0x1] %vm296_vm2, %v475_v42 }
0x160f   :  { %491 = vst.msk [vmem:[#allocation9 + $0x21] sm:$0x1] %vm296_vm2, %v460_v40  ;;  %v808_v23 = vsel %vm64_vm0, %v2337_v26, %v806_v45  ;;  %v636_v48 = vcombine.high %v634_v43, %v634_v43  ;;  %v650_v49 = vrot.slane %v634_v43, %v2350_v4  ;;  %v657_v5 = vrot.slane %v635_v44, %v2350_v4 }
0x1610   :  { %v665_v50 = vcombine.high %v643_v21, %v643_v21  ;;  %677 = vst.msk [vmem:[#allocation9 + $0x2] sm:$0x1] %vm296_vm2, %v643_v21  ;;  %v478_v51 = vcombine.high %v474_v46, %v474_v46  ;;  %490 = vst.msk [vmem:[#allocation9 + $0x19] sm:$0x1] %vm296_vm2, %v477_v0  ;;  %v810_v52 = vcombine.high %v808_v23, %v808_v23 }
0x1611   :  { %492 = vst.msk [vmem:[#allocation9 + $0x29] sm:$0x1] %vm296_vm2, %v474_v46  ;;  %493 = vst.msk [vmem:[#allocation9 + $0x31] sm:$0x1] %vm296_vm2, %v476_v47  ;;  %v817_v53 = vrot.slane %v808_v23, %v2350_v4  ;;  %v664_v29 = vrot.slane %v636_v48, %v2350_v4  ;;  %v666_v55 = vcombine.high %v650_v49, %v650_v49  ;;  %v996_v56 = vpop.permute.xlu0 %995 }
0x1612   :  { %v667_v57 = vcombine.high %v657_v5, %v657_v5  ;;  %678 = vst.msk [vmem:[#allocation9 + $0xa] sm:$0x1] %vm296_vm2, %v657_v5  ;;  %679 = vst.msk [vmem:[#allocation9 + $0x12] sm:$0x1] %vm296_vm2, %v665_v50  ;;  %v824_v25 = vrot.slane %v810_v52, %v2350_v4  ;;  %v998_v26 = vsel %vm64_vm0, %v2339_v59, %v996_v56 }
0x1613   :  { %681 = vst.msk [vmem:[#allocation9 + $0x22] sm:$0x1] %vm296_vm2, %v650_v49  ;;  %494 = vst.msk [vmem:[#allocation9 + $0x39] sm:$0x1] %vm296_vm2, %v478_v51  ;;  %v825_v54 = vcombine.high %v817_v53, %v817_v53  ;;  %v833_v32 = vrot.slane %v817_v53, %v2350_v4  ;;  %v668_v58 = vcombine.high %v664_v29, %v664_v29 }
0x1614   :  { %680 = vst.msk [vmem:[#allocation9 + $0x1a] sm:$0x1] %vm296_vm2, %v667_v57  ;;  %682 = vst.msk [vmem:[#allocation9 + $0x2a] sm:$0x1] %vm296_vm2, %v664_v29  ;;  %v1000_v61 = vcombine.high %v998_v26, %v998_v26  ;;  %v1007_v62 = vrot.slane %v998_v26, %v2350_v4  ;;  %v826_v1 = vcombine.high %v824_v25, %v824_v25 }
0x1615   :  { %683 = vst.msk [vmem:[#allocation9 + $0x32] sm:$0x1] %vm296_vm2, %v666_v55  ;;  %v840_v63 = vrot.slane %v824_v25, %v2350_v4  ;;  %v847_v3 = vrot.slane %v825_v54, %v2350_v4  ;;  %v855_v6 = vcombine.high %v833_v32, %v833_v32  ;;  %867 = vst.msk [vmem:[#allocation9 + $0x3] sm:$0x1] %vm296_vm2, %v833_v32  ;;  %v1186_v9 = vpop.permute.xlu0 %1185 }
0x1616   :  { %684 = vst.msk [vmem:[#allocation9 + $0x3a] sm:$0x1] %vm296_vm2, %v668_v58  ;;  %v1014_v59 = vrot.slane %v1000_v61, %v2350_v4  ;;  %v1015_v7 = vcombine.high %v1007_v62, %v1007_v62  ;;  %v1023_v8 = vrot.slane %v1007_v62, %v2350_v4  ;;  %v854_v10 = vrot.slane %v826_v1, %v2350_v4 }
0x1617   :  { %v856_v11 = vcombine.high %v840_v63, %v840_v63  ;;  %v857_v12 = vcombine.high %v847_v3, %v847_v3  ;;  %868 = vst.msk [vmem:[#allocation9 + $0xb] sm:$0x1] %vm296_vm2, %v847_v3  ;;  %869 = vst.msk [vmem:[#allocation9 + $0x13] sm:$0x1] %vm296_vm2, %v855_v6  ;;  %v1188_v2 = vsel %vm64_vm0, %v2341_v60, %v1186_v9 }
0x1618   :  { %871 = vst.msk [vmem:[#allocation9 + $0x23] sm:$0x1] %vm296_vm2, %v840_v63  ;;  %v1016_v13 = vcombine.high %v1014_v59, %v1014_v59  ;;  %v1030_v14 = vrot.slane %v1014_v59, %v2350_v4  ;;  %v1037_v15 = vrot.slane %v1015_v7, %v2350_v4  ;;  %v1045_v16 = vcombine.high %v1023_v8, %v1023_v8 }
0x1619   :  { %1057 = vst.msk [vmem:[#allocation9 + $0x4] sm:$0x1] %vm296_vm2, %v1023_v8  ;;  %v858_v17 = vcombine.high %v854_v10, %v854_v10  ;;  %870 = vst.msk [vmem:[#allocation9 + $0x1b] sm:$0x1] %vm296_vm2, %v857_v12  ;;  %v1190_v18 = vcombine.high %v1188_v2, %v1188_v2  ;;  %v1197_v19 = vrot.slane %v1188_v2, %v2350_v4  ;;  %v1376_v24 = vpop.permute.xlu0 %1375 }
0x161a   :  { %872 = vst.msk [vmem:[#allocation9 + $0x2b] sm:$0x1] %vm296_vm2, %v854_v10  ;;  %873 = vst.msk [vmem:[#allocation9 + $0x33] sm:$0x1] %vm296_vm2, %v856_v11  ;;  %v1044_v60 = vrot.slane %v1016_v13, %v2350_v4  ;;  %v1046_v20 = vcombine.high %v1030_v14, %v1030_v14  ;;  %v1047_v22 = vcombine.high %v1037_v15, %v1037_v15 }
0x161b   :  { %1058 = vst.msk [vmem:[#allocation9 + $0xc] sm:$0x1] %vm296_vm2, %v1037_v15  ;;  %1059 = vst.msk [vmem:[#allocation9 + $0x14] sm:$0x1] %vm296_vm2, %v1045_v16  ;;  %v1204_v27 = vrot.slane %v1190_v18, %v2350_v4  ;;  %v1205_v30 = vcombine.high %v1197_v19, %v1197_v19  ;;  %v1213_v33 = vrot.slane %v1197_v19, %v2350_v4 }
0x161c   :  { %1061 = vst.msk [vmem:[#allocation9 + $0x24] sm:$0x1] %vm296_vm2, %v1030_v14  ;;  %874 = vst.msk [vmem:[#allocation9 + $0x3b] sm:$0x1] %vm296_vm2, %v858_v17  ;;  %v1378_v34 = vsel %vm64_vm0, %v2343_v28, %v1376_v24  ;;  %v1048_v35 = vcombine.high %v1044_v60, %v1044_v60 }
0x161d   :  { %1060 = vst.msk [vmem:[#allocation9 + $0x1c] sm:$0x1] %vm296_vm2, %v1047_v22  ;;  %1062 = vst.msk [vmem:[#allocation9 + $0x2c] sm:$0x1] %vm296_vm2, %v1044_v60  ;;  %v1380_v36 = vcombine.high %v1378_v34, %v1378_v34  ;;  %v1387_v37 = vrot.slane %v1378_v34, %v2350_v4  ;;  %v1206_v38 = vcombine.high %v1204_v27, %v1204_v27 }
0x161e   :  { %1063 = vst.msk [vmem:[#allocation9 + $0x34] sm:$0x1] %vm296_vm2, %v1046_v20  ;;  %v1220_v39 = vrot.slane %v1204_v27, %v2350_v4  ;;  %v1227_v40 = vrot.slane %v1205_v30, %v2350_v4  ;;  %v1235_v41 = vcombine.high %v1213_v33, %v1213_v33  ;;  %1247 = vst.msk [vmem:[#allocation9 + $0x5] sm:$0x1] %vm296_vm2, %v1213_v33 }
0x161f   :  { %1064 = vst.msk [vmem:[#allocation9 + $0x3c] sm:$0x1] %vm296_vm2, %v1048_v35  ;;  %v1394_v28 = vrot.slane %v1380_v36, %v2350_v4  ;;  %v1395_v42 = vcombine.high %v1387_v37, %v1387_v37  ;;  %v1403_v43 = vrot.slane %v1387_v37, %v2350_v4  ;;  %v1234_v44 = vrot.slane %v1206_v38, %v2350_v4 }
0x1620   :  { %v1236_v21 = vcombine.high %v1220_v39, %v1220_v39  ;;  %v1237_v45 = vcombine.high %v1227_v40, %v1227_v40  ;;  %1248 = vst.msk [vmem:[#allocation9 + $0xd] sm:$0x1] %vm296_vm2, %v1227_v40  ;;  %1249 = vst.msk [vmem:[#allocation9 + $0x15] sm:$0x1] %vm296_vm2, %v1235_v41 }
0x1621   :  { %1251 = vst.msk [vmem:[#allocation9 + $0x25] sm:$0x1] %vm296_vm2, %v1220_v39  ;;  %v1396_v46 = vcombine.high %v1394_v28, %v1394_v28  ;;  %v1410_v47 = vrot.slane %v1394_v28, %v2350_v4  ;;  %v1417_v0 = vrot.slane %v1395_v42, %v2350_v4  ;;  %v1425_v23 = vcombine.high %v1403_v43, %v1403_v43 }
0x1622   :  { %1437 = vst.msk [vmem:[#allocation9 + $0x6] sm:$0x1] %vm296_vm2, %v1403_v43  ;;  %v1238_v48 = vcombine.high %v1234_v44, %v1234_v44  ;;  %1250 = vst.msk [vmem:[#allocation9 + $0x1d] sm:$0x1] %vm296_vm2, %v1237_v45 }
0x1623   :  { %1252 = vst.msk [vmem:[#allocation9 + $0x2d] sm:$0x1] %vm296_vm2, %v1234_v44  ;;  %1253 = vst.msk [vmem:[#allocation9 + $0x35] sm:$0x1] %vm296_vm2, %v1236_v21  ;;  %v1424_v49 = vrot.slane %v1396_v46, %v2350_v4  ;;  %v1426_v5 = vcombine.high %v1410_v47, %v1410_v47  ;;  %v1427_v50 = vcombine.high %v1417_v0, %v1417_v0 }
0x1624   :  { %1438 = vst.msk [vmem:[#allocation9 + $0xe] sm:$0x1] %vm296_vm2, %v1417_v0  ;;  %1439 = vst.msk [vmem:[#allocation9 + $0x16] sm:$0x1] %vm296_vm2, %v1425_v23 }
0x1625   :  { %1441 = vst.msk [vmem:[#allocation9 + $0x26] sm:$0x1] %vm296_vm2, %v1410_v47  ;;  %1254 = vst.msk [vmem:[#allocation9 + $0x3d] sm:$0x1] %vm296_vm2, %v1238_v48  ;;  %v1428_v51 = vcombine.high %v1424_v49, %v1424_v49 }
0x1626   :  { %1440 = vst.msk [vmem:[#allocation9 + $0x1e] sm:$0x1] %vm296_vm2, %v1427_v50  ;;  %1442 = vst.msk [vmem:[#allocation9 + $0x2e] sm:$0x1] %vm296_vm2, %v1424_v49 }
0x1627   :  { %1443 = vst.msk [vmem:[#allocation9 + $0x36] sm:$0x1] %vm296_vm2, %v1426_v5  ;;  %1444 = vst.msk [vmem:[#allocation9 + $0x3e] sm:$0x1] %vm296_vm2, %v1428_v51 }
0x16d1   :  { %v1554_v52 = vpop.f32.mrb[28].mxu1 }
0x16d2   :  { %1565 = vrot.lane.b32.xlu0 %v1554_v52, %s2028_s29  ;;  %v1857_v53 = vpop.f32.mrb[29].mxu1 }
0x16d3   :  { %v1557_v29 = vpop.f32.mrb[30].mxu1 }
0x16d4   :  { %v1858_v55 = vpop.f32.mrb[31].mxu1 }
0x1744   :  { %v1566_v57 = vpop.permute.xlu0 %1565 }
0x1745   :  { %v1568_v56 = vsel %vm64_vm0, %v2345_v31, %v1566_v57 }
0x1746   :  { %v1570_v25 = vcombine.high %v1568_v56, %v1568_v56  ;;  %v1577_v54 = vrot.slane %v1568_v56, %v2350_v4 }
0x1748   :  { %v1584_v32 = vrot.slane %v1570_v25, %v2350_v4  ;;  %v1585_v26 = vcombine.high %v1577_v54, %v1577_v54  ;;  %v1593_v58 = vrot.slane %v1577_v54, %v2350_v4 }
0x174a   :  { %v1586_v61 = vcombine.high %v1584_v32, %v1584_v32  ;;  %v1600_v62 = vrot.slane %v1584_v32, %v2350_v4  ;;  %v1607_v1 = vrot.slane %v1585_v26, %v2350_v4  ;;  %v1615_v63 = vcombine.high %v1593_v58, %v1593_v58  ;;  %1627 = vst.msk [vmem:[#allocation9 + $0x7] sm:$0x1] %vm296_vm2, %v1593_v58 }
0x174c   :  { %v1614_v31 = vrot.slane %v1586_v61, %v2350_v4  ;;  %v1616_v3 = vcombine.high %v1600_v62, %v1600_v62  ;;  %v1617_v6 = vcombine.high %v1607_v1, %v1607_v1  ;;  %1628 = vst.msk [vmem:[#allocation9 + $0xf] sm:$0x1] %vm296_vm2, %v1607_v1  ;;  %1629 = vst.msk [vmem:[#allocation9 + $0x17] sm:$0x1] %vm296_vm2, %v1615_v63 }
0x174d   :  { %1631 = vst.msk [vmem:[#allocation9 + $0x27] sm:$0x1] %vm296_vm2, %v1600_v62 }
0x174e   :  { %v1618_v59 = vcombine.high %v1614_v31, %v1614_v31  ;;  %1630 = vst.msk [vmem:[#allocation9 + $0x1f] sm:$0x1] %vm296_vm2, %v1617_v6  ;;  %1632 = vst.msk [vmem:[#allocation9 + $0x2f] sm:$0x1] %vm296_vm2, %v1614_v31 }
0x174f   :  { %1633 = vst.msk [vmem:[#allocation9 + $0x37] sm:$0x1] %vm296_vm2, %v1616_v3 }
0x1750   :  { %1634 = vst.msk [vmem:[#allocation9 + $0x3f] sm:$0x1] %vm296_vm2, %v1618_v59 }
0x1751   :  { %2001 = shalt.err (!%p1998_p0)
}
0x1752   :  { %s2002_s8 = scalar_lea.hbm %s2497_s4, 1024 }
0x1753   :  { %p2003_p1 = scmp.ne.s32.totalorder %s2497_s4, %s2002_s8  ;;  %p2006_p2 = scmp.lt.u32.totalorder %s2002_s8, %s2497_s4 }
0x1755   :  { %p2008_p3 = pnand %p2006_p2, %p2003_p1 }
0x1757   :  { %2011 = shalt.err (!%p2008_p3)
}
0x1758   :  { %1647 = dma.vmem_to_hbm [thread:$0]  %s1642_s30, 1024, %s2497_s4, [#allocation5], %s2022_s1, %s2022_s1, %s2023_s13  }
0x1759   :  { %2016 = dma.done.wait [#allocation5], 1024  }
0x175a   :  { %2017 = vsyncadd [#allocation5], 4294966272 }
0x175b   :  { %1651 = vsyncpa [#allocation4], 1 }
0x175c   :  { %1652 = vsyncpa [#allocation7], 1 }
0x175d   :  { %1653 = vsyncpa [#allocation5], 1 }

</bundles_post_ra>
